<compile_context>
chip_gen: v5e
topology: v5e:2x2
jax: 0.10.0
libtpu: 0.0.40
codegen_flags: <defaults>
</compile_context>

<pallas_src>
import functools
import math

import jax
import jax.numpy as jnp
from jax.experimental import pallas as pl
from jax.experimental.pallas import tpu as pltpu


@functools.lru_cache(maxsize=None)
def _vmem_limit_bytes():
    """Generation-aware scoped-VMEM limit: ~3/4 of physical VMEM, capped at 112 MiB."""
    default = 48 * 1024 * 1024  # safe on every generation (v7x has 64 MiB physical)
    try:
        info = pltpu.get_tpu_info()
        phys = int(getattr(info, "vmem_capacity_bytes", 0) or 0)
        if phys <= 0:
            return default
        return max(32 * 1024 * 1024, min((phys * 3) // 4, 112 * 1024 * 1024))
    except Exception:
        return default


def _pick_tile(dim, target, quantum):
    """Largest block <= target that divides `dim` and is a multiple of `quantum`.
    If dim <= target use the full dim.  Falls back to the full dim only when no
    quantum-multiple divisor exists (rare, hardware-unfriendly shapes)."""
    if dim <= target:
        return dim
    cap = (target // quantum) * quantum
    for cand in range(cap, 0, -quantum):
        if dim % cand == 0:
            return cand
    return dim


# -----------------------------------------------------------------------------
# Fused Linear kernels: X @ W + b [+ residual] [-> GELU|sigmoid] [-> LayerNorm]
# -----------------------------------------------------------------------------
def _linear_epilogue(y, b_ref, res_ref, g_ref, bb_ref, *, activation, ln_eps):
    y = y + b_ref[...]
    if res_ref is not None:
        y = y + res_ref[...].astype(jnp.float32)
    if activation == "gelu":
        # TODO(synk): tanh-approx GELU inside the kernel; HF BERT's exact erf-GELU
        # differs by <1e-3 relative.
        c = 0.7978845608028654  # sqrt(2/pi)
        y = 0.5 * y * (1.0 + jnp.tanh(c * (y + 0.044715 * y * y * y)))
    elif activation == "sigmoid":
        y = 1.0 / (1.0 + jnp.exp(-y))
    if g_ref is not None:
        mean = jnp.mean(y, axis=-1, keepdims=True)
        var = jnp.mean(jnp.square(y - mean), axis=-1, keepdims=True)
        y = (y - mean) * jax.lax.rsqrt(var + ln_eps) * g_ref[...] + bb_ref[...]
    return y


def _linear_kernel_1k(*refs, activation, ln_eps, has_residual, has_ln):
    """Single-K variant: full reduction dim resident in VMEM -> no accumulator."""
    it = iter(refs)
    x_ref = next(it)
    w_ref = next(it)
    b_ref = next(it)
    res_ref = next(it) if has_residual else None
    g_ref = next(it) if has_ln else None
    bb_ref = next(it) if has_ln else None
    o_ref = next(it)
    y = jnp.dot(x_ref[...], w_ref[...], preferred_element_type=jnp.float32)
    y = _linear_epilogue(y, b_ref, res_ref, g_ref, bb_ref,
                         activation=activation, ln_eps=ln_eps)
    o_ref[...] = y.astype(o_ref.dtype)


def _linear_kernel_multik(*refs, activation, ln_eps, has_residual, has_ln):
    """K-tiled variant with f32 VMEM accumulator (used only when K > tk)."""
    it = iter(refs)
    x_ref = next(it)
    w_ref = next(it)
    b_ref = next(it)
    res_ref = next(it) if has_residual else None
    g_ref = next(it) if has_ln else None
    bb_ref = next(it) if has_ln else None
    o_ref = next(it)
    acc_ref = next(it)

    @pl.when(pl.program_id(2) == 0)
    def _init():
        acc_ref[...] = jnp.zeros_like(acc_ref)

    acc_ref[...] += jnp.dot(x_ref[...], w_ref[...],
                            preferred_element_type=jnp.float32)

    @pl.when(pl.program_id(2) == pl.num_programs(2) - 1)
    def _finalize():
        y = _linear_epilogue(acc_ref[...], b_ref, res_ref, g_ref, bb_ref,
                             activation=activation, ln_eps=ln_eps)
        o_ref[...] = y.astype(o_ref.dtype)


def pallas_linear(x2d, w, b, *, residual=None, ln=None, activation=None,
                  out_dtype=jnp.bfloat16, tm=512, tn=256, tk=4096):
    """x2d: (M, K); w: (K, N) bf16; b: (N,) f32. Optional fused residual, activation, LN.
    Inputs/residual are pre-cast to bf16 outside the hot loop; output dtype selectable."""
    M, K = x2d.shape
    N = w.shape[1]
    has_res = residual is not None
    has_ln = ln is not None

    x2d = x2d.astype(jnp.bfloat16)          # no-op if already bf16
    w = w.astype(jnp.bfloat16)
    if has_res:
        residual = residual.astype(jnp.bfloat16)

    if has_ln:
        tn = N  # LayerNorm reduces over the full feature dim -> keep N in one block
    bm = _pick_tile(M, tm, 8)
    bn = _pick_tile(N, tn, 128)
    bk = _pick_tile(K, tk, 128)
    nk = K // bk

    eps = 0.0
    gamma = beta = None
    if has_ln:
        gamma, beta, eps = ln

    if nk == 1:
        # ---- weights fully VMEM-resident: 2-D grid, no accumulator scratch ----
        in_specs = [
            pl.BlockSpec((bm, K), lambda i, j: (i, 0)),
            pl.BlockSpec((K, bn), lambda i, j: (0, j)),
            pl.BlockSpec((1, bn), lambda i, j: (0, j)),
        ]
        args = [x2d, w, b.reshape(1, N)]
        if has_res:
            in_specs.append(pl.BlockSpec((bm, bn), lambda i, j: (i, j)))
            args.append(residual)
        if has_ln:
            in_specs.append(pl.BlockSpec((1, bn), lambda i, j: (0, j)))
            in_specs.append(pl.BlockSpec((1, bn), lambda i, j: (0, j)))
            args.extend([gamma.reshape(1, N), beta.reshape(1, N)])

        kernel = functools.partial(
            _linear_kernel_1k, activation=activation, ln_eps=eps,
            has_residual=has_res, has_ln=has_ln)
        return pl.pallas_call(
            kernel,
            out_shape=jax.ShapeDtypeStruct((M, N), out_dtype),
            grid=(M // bm, N // bn),
            in_specs=in_specs,
            out_specs=pl.BlockSpec((bm, bn), lambda i, j: (i, j)),
            compiler_params=pltpu.CompilerParams(
                dimension_semantics=("parallel", "parallel"),
                vmem_limit_bytes=_vmem_limit_bytes()),
        )(*args)

    # ---- K-tiled path (K > tk): 3-D grid with f32 accumulator ----
    in_specs = [
        pl.BlockSpec((bm, bk), lambda i, j, k: (i, k)),
        pl.BlockSpec((bk, bn), lambda i, j, k: (k, j)),
        pl.BlockSpec((1, bn), lambda i, j, k: (0, j)),
    ]
    args = [x2d, w, b.reshape(1, N)]
    if has_res:
        in_specs.append(pl.BlockSpec((bm, bn), lambda i, j, k: (i, j)))
        args.append(residual)
    if has_ln:
        in_specs.append(pl.BlockSpec((1, bn), lambda i, j, k: (0, j)))
        in_specs.append(pl.BlockSpec((1, bn), lambda i, j, k: (0, j)))
        args.extend([gamma.reshape(1, N), beta.reshape(1, N)])

    kernel = functools.partial(
        _linear_kernel_multik, activation=activation, ln_eps=eps,
        has_residual=has_res, has_ln=has_ln)
    return pl.pallas_call(
        kernel,
        out_shape=jax.ShapeDtypeStruct((M, N), out_dtype),
        grid=(M // bm, N // bn, nk),
        in_specs=in_specs,
        out_specs=pl.BlockSpec((bm, bn), lambda i, j, k: (i, j)),
        scratch_shapes=[pltpu.VMEM((bm, bn), jnp.float32)],
        compiler_params=pltpu.CompilerParams(
            dimension_semantics=("parallel", "parallel", "arbitrary"),
            vmem_limit_bytes=_vmem_limit_bytes()),
    )(*args)


# -----------------------------------------------------------------------------
# BertEmbeddings: X + position + token_type(0) -> LayerNorm
# 2-D grid (batch, seq-blocks); the (S, H) positional slab is indexed by the seq
# axis only, so it is never tiled into a (B*S, H) HBM tensor.
# -----------------------------------------------------------------------------
def _add_ln_kernel(x_ref, pos_ref, g_ref, b_ref, o_ref, *, eps):
    y = x_ref[...].astype(jnp.float32) + pos_ref[...]          # (1,bs,H) + (bs,H)
    mean = jnp.mean(y, axis=-1, keepdims=True)
    var = jnp.mean(jnp.square(y - mean), axis=-1, keepdims=True)
    o_ref[...] = ((y - mean) * jax.lax.rsqrt(var + eps) * g_ref[...]
                  + b_ref[...]).astype(o_ref.dtype)


def pallas_add_layernorm(x3d, pos, gamma, beta, eps, *, ts=256,
                         out_dtype=jnp.bfloat16):
    B, S, H = x3d.shape
    bs = _pick_tile(S, ts, 8)
    return pl.pallas_call(
        functools.partial(_add_ln_kernel, eps=eps),
        out_shape=jax.ShapeDtypeStruct((B, S, H), out_dtype),
        grid=(B, S // bs),
        in_specs=[
            pl.BlockSpec((1, bs, H), lambda b, j: (b, j, 0)),
            pl.BlockSpec((bs, H), lambda b, j: (j, 0)),
            pl.BlockSpec((1, H), lambda b, j: (0, 0)),
            pl.BlockSpec((1, H), lambda b, j: (0, 0)),
        ],
        out_specs=pl.BlockSpec((1, bs, H), lambda b, j: (b, j, 0)),
        compiler_params=pltpu.CompilerParams(
            dimension_semantics=("parallel", "parallel"),
            vmem_limit_bytes=_vmem_limit_bytes()),
    )(x3d, pos, gamma.reshape(1, H), beta.reshape(1, H))


# -----------------------------------------------------------------------------
# Attention kernel: consumes the (B*S, 3H) QKV slab directly (no HBM relayout),
# one grid step per batch item, per-head compute in VMEM, output written as a
# lane-dense (S, H) slab.  The 1/sqrt(Dh) scale is pre-folded into the Q weights.
# -----------------------------------------------------------------------------
def _attention_kernel(qkv_ref, bias_ref, o_ref, *, n_heads, head_dim):
    H = n_heads * head_dim
    bias = bias_ref[0]                                  # (1, S) additive mask, f32
    # TODO(synk): for long sequences, tile over heads / KV blocks with an online
    # softmax (flash) accumulator instead of a full (S, S) score matrix per head.
    for h in range(n_heads):
        lo = h * head_dim
        q = qkv_ref[:, lo:lo + head_dim]                # (S, Dh) bf16, already scaled
        k = qkv_ref[:, H + lo:H + lo + head_dim]        # (S, Dh) bf16
        v = qkv_ref[:, 2 * H + lo:2 * H + lo + head_dim]
        # q @ k^T without materializing a transpose (contract last dims).
        s = jax.lax.dot_general(q, k, (((1,), (1,)), ((), ())),
                                preferred_element_type=jnp.float32)   # (S, S) f32
        s = s + bias
        s = s - jnp.max(s, axis=-1, keepdims=True)
        p = jnp.exp(s)
        p = p * pl.reciprocal(jnp.sum(p, axis=-1, keepdims=True), approx=True)
        ctx = jnp.dot(p.astype(jnp.bfloat16), v,
                      preferred_element_type=jnp.float32)             # (S, Dh)
        o_ref[:, lo:lo + head_dim] = ctx.astype(o_ref.dtype)


def pallas_attention(qkv2d, bias, *, n_heads, head_dim, seq_len,
                     out_dtype=jnp.bfloat16):
    """qkv2d: (B*S, 3H) bf16; bias: (B, 1, S) f32 -> context (B*S, H)."""
    BS, H3 = qkv2d.shape
    H = n_heads * head_dim
    B = BS // seq_len
    kernel = functools.partial(_attention_kernel, n_heads=n_heads,
                               head_dim=head_dim)
    return pl.pallas_call(
        kernel,
        out_shape=jax.ShapeDtypeStruct((BS, H), out_dtype),
        grid=(B,),
        in_specs=[
            pl.BlockSpec((seq_len, H3), lambda b: (b, 0)),
            pl.BlockSpec((1, 1, seq_len), lambda b: (b, 0, 0)),
        ],
        out_specs=pl.BlockSpec((seq_len, H), lambda b: (b, 0)),
        compiler_params=pltpu.CompilerParams(
            dimension_semantics=("parallel",),
            vmem_limit_bytes=_vmem_limit_bytes()),
    )(qkv2d, bias)


# -----------------------------------------------------------------------------
# Parameter initialization (deterministic, synthetic; matches shapes of __init__)
# -----------------------------------------------------------------------------
def init_params(key, cfg):
    H = cfg["hidden_dim"]
    h3 = H // 3
    h2 = H // 2
    I = cfg["intermediate_size"]
    keys = list(jax.random.split(key, 64))
    kit = iter(keys)

    def nrm(shape, std=0.02):
        return jax.random.normal(next(kit), shape, jnp.float32) * std

    params = {
        "emb_interaction": nrm((3, h3)),
        "emb_test": nrm((cfg["n_test"] + 1, h3)),
        "emb_question": nrm((cfg["n_questions"] + 1, h3)),
        "emb_tag": nrm((cfg["n_tag"] + 1, h3)),
        "emb_big": nrm((cfg["n_big_features"] + 1, h3)),
        "comb_w": nrm((h3 * cfg["n_cate"], h2)),
        "comb_b": jnp.zeros((h2,), jnp.float32),
        "comb_ln_g": jnp.ones((h2,), jnp.float32),
        "comb_ln_b": jnp.zeros((h2,), jnp.float32),
        "cont_w": nrm((cfg["n_cont"], h2)),
        "cont_b": jnp.zeros((h2,), jnp.float32),
        "cont_ln_g": jnp.ones((h2,), jnp.float32),
        "cont_ln_b": jnp.zeros((h2,), jnp.float32),
        "pos_emb": nrm((cfg["max_seq_len"], H)),
        "tok_type_emb": nrm((2, H)),
        "emb_ln_g": jnp.ones((H,), jnp.float32),
        "emb_ln_b": jnp.zeros((H,), jnp.float32),
        "fc_w": nrm((H, 1)),
        "fc_b": jnp.zeros((1,), jnp.float32),
        "layers": [],
    }
    for _ in range(cfg["n_layers"]):
        params["layers"].append({
            "q_w": nrm((H, H)), "q_b": jnp.zeros((H,), jnp.float32),
            "k_w": nrm((H, H)), "k_b": jnp.zeros((H,), jnp.float32),
            "v_w": nrm((H, H)), "v_b": jnp.zeros((H,), jnp.float32),
            "ao_w": nrm((H, H)), "ao_b": jnp.zeros((H,), jnp.float32),
            "ao_ln_g": jnp.ones((H,), jnp.float32),
            "ao_ln_b": jnp.zeros((H,), jnp.float32),
            "i_w": nrm((H, I)), "i_b": jnp.zeros((I,), jnp.float32),
            "o_w": nrm((I, H)), "o_b": jnp.zeros((H,), jnp.float32),
            "o_ln_g": jnp.ones((H,), jnp.float32),
            "o_ln_b": jnp.zeros((H,), jnp.float32),
        })
    return params


def prepare_params(params, cfg):
    """One-time inference prep: fuse QKV weights (folding the 1/sqrt(Dh) attention
    scale into the query projection), pad fc to a lane-dense 128-wide head, and cast
    matmul weights to bf16 (halves weight HBM traffic, hits the bf16 MXU path).
    Biases / LayerNorm params / embeddings stay f32."""
    H = cfg["hidden_dim"]
    Dh = H // cfg["n_heads"]
    scale = 1.0 / math.sqrt(Dh)
    p = dict(params)

    def wcast(w):
        return w.astype(jnp.bfloat16)

    p["comb_w"] = wcast(params["comb_w"])
    p["cont_w"] = wcast(params["cont_w"])
    # fc head padded to 128 output lanes (only column 0 is the real logit)
    p["fc_w"] = wcast(jnp.pad(params["fc_w"], ((0, 0), (0, 127))))
    p["fc_b"] = jnp.pad(params["fc_b"], (0, 127))

    layers = []
    for lp in params["layers"]:
        nl = dict(lp)
        nl["qkv_w"] = wcast(jnp.concatenate(
            [lp["q_w"] * scale, lp["k_w"], lp["v_w"]], axis=1))
        nl["qkv_b"] = jnp.concatenate([lp["q_b"] * scale, lp["k_b"], lp["v_b"]])
        nl["ao_w"] = wcast(lp["ao_w"])
        nl["i_w"] = wcast(lp["i_w"])
        nl["o_w"] = wcast(lp["o_w"])
        for k in ("q_w", "k_w", "v_w", "q_b", "k_b", "v_b"):
            nl.pop(k)
        layers.append(nl)
    p["layers"] = layers
    return p


# -----------------------------------------------------------------------------
# Forward pass (mirrors CustomBert.forward + BertModel encoder)
# -----------------------------------------------------------------------------
def custom_bert_forward(params, cate_inputs, mask, cont_features, cfg):
    test, question, tag, interaction, big_features = cate_inputs
    B, S = interaction.shape
    H = cfg["hidden_dim"]
    nH = cfg["n_heads"]
    Dh = H // nH

    # ----- categorical embeddings (gather = plain-JAX glue) -----
    e_inter = params["emb_interaction"][interaction]
    e_test = params["emb_test"][test]
    e_q = params["emb_question"][question]
    e_tag = params["emb_tag"][tag]
    e_big = params["emb_big"][big_features]
    # torch.cat order: [interaction, test, question, big, tag]
    embed = jnp.concatenate([e_inter, e_test, e_q, e_big, e_tag], axis=2)

    # ----- comb_proj / cont_embed: Linear + fused LayerNorm (eps=1e-5), bf16 out -----
    embed2d = embed.reshape(B * S, -1)
    cate = pallas_linear(embed2d, params["comb_w"], params["comb_b"],
                         ln=(params["comb_ln_g"], params["comb_ln_b"], 1e-5))
    cont2d = cont_features.reshape(B * S, -1)
    cont = pallas_linear(cont2d, params["cont_w"], params["cont_b"],
                         ln=(params["cont_ln_g"], params["cont_ln_b"], 1e-5))
    X = jnp.concatenate([cate, cont], axis=-1)                         # (B*S, H) bf16

    # ----- BertEmbeddings: + position + token_type(0), fused LN (eps=1e-12) -----
    pos_tok = params["pos_emb"][:S] + params["tok_type_emb"][0][None, :]   # (S, H) f32
    X = pallas_add_layernorm(X.reshape(B, S, H), pos_tok,
                             params["emb_ln_g"], params["emb_ln_b"], 1e-12)
    X = X.reshape(B * S, H)
    # (dropout = identity in deterministic eval semantics)

    # ----- extended attention mask: (1 - mask) * -10000, never repeated over heads -----
    bias = ((1.0 - mask.astype(jnp.float32)) * -10000.0)[:, None, :]       # (B, 1, S)

    # ----- BertEncoder layers -----
    for lp in params["layers"]:
        # fused QKV projection: one [H, 3H] matmul; attention reads the slab directly
        qkv = pallas_linear(X, lp["qkv_w"], lp["qkv_b"])                   # (B*S, 3H) bf16
        ctx = pallas_attention(qkv, bias, n_heads=nH, head_dim=Dh,
                               seq_len=S)                                  # (B*S, H) bf16

        # attention output projection + residual + LayerNorm fused in one kernel
        X = pallas_linear(ctx, lp["ao_w"], lp["ao_b"], residual=X,
                          ln=(lp["ao_ln_g"], lp["ao_ln_b"], 1e-12))

        # FFN: intermediate matmul with fused GELU, then output matmul + residual + LN
        inter = pallas_linear(X, lp["i_w"], lp["i_b"], activation="gelu")
        X = pallas_linear(inter, lp["o_w"], lp["o_b"], residual=X,
                          ln=(lp["o_ln_g"], lp["o_ln_b"], 1e-12))

    # ----- fc + sigmoid (fused, lane-dense 128-wide output; column 0 is the logit) -----
    # TODO(synk): optionally fuse this head into the last o-projection finalize.
    preds = pallas_linear(X, params["fc_w"], params["fc_b"], activation="sigmoid",
                          out_dtype=jnp.float32)
    return preds[:, 0].reshape(B, S)


# -----------------------------------------------------------------------------
# Main
# -----------------------------------------------------------------------------
if __name__ == "__main__":
    cfg = dict(
        hidden_dim=32,
        n_layers=2,
        n_heads=4,
        max_seq_len=8,
        n_test=10,
        n_questions=20,
        n_tag=7,
        n_big_features=5,
        n_cate=5,
        n_cont=3,
        # HF BertConfig default is 3072; scaled to 4*hidden for the small synthetic config.
        intermediate_size=128,
    )

    key = jax.random.PRNGKey(0)
    pkey, dkey = jax.random.split(key)
    params = prepare_params(init_params(pkey, cfg), cfg)

    B, S = 2, cfg["max_seq_len"]
    ks = jax.random.split(dkey, 7)
    test = jax.random.randint(ks[0], (B, S), 0, cfg["n_test"] + 1)
    question = jax.random.randint(ks[1], (B, S), 0, cfg["n_questions"] + 1)
    tag = jax.random.randint(ks[2], (B, S), 0, cfg["n_tag"] + 1)
    interaction = jax.random.randint(ks[3], (B, S), 0, 3)
    big_features = jax.random.randint(ks[4], (B, S), 0, cfg["n_big_features"] + 1)
    mask = (jax.random.uniform(ks[5], (B, S)) > 0.2).astype(jnp.float32)
    cont_features = jax.random.normal(ks[6], (B, S, cfg["n_cont"]), jnp.float32)

    forward_fn = jax.jit(functools.partial(custom_bert_forward, cfg=cfg))
    preds = forward_fn(
        params, (test, question, tag, interaction, big_features), mask, cont_features
    )
    preds = jax.block_until_ready(preds)
    assert preds.shape == (B, S)
    assert bool(jnp.all(jnp.isfinite(preds)))
    print("KERNEL_OK")
</pallas_src>

<mosaic_0001>
module attributes {stable_mosaic.version = 11 : i64} {
  func.func @_linear_kernel_1k(%arg0: i32, %arg1: i32, %arg2: memref<16x3xbf16, #tpu.memory_space<vmem>>, %arg3: memref<3x16xbf16, #tpu.memory_space<vmem>>, %arg4: memref<1x16xf32, #tpu.memory_space<vmem>>, %arg5: memref<1x16xf32, #tpu.memory_space<vmem>>, %arg6: memref<1x16xf32, #tpu.memory_space<vmem>>, %arg7: memref<16x16xbf16, #tpu.memory_space<vmem>>) attributes {dimension_semantics = [#tpu.dimension_semantics<parallel>, #tpu.dimension_semantics<parallel>], iteration_bounds = array<i64: 1, 1>, scalar_prefetch = 0 : i64, scratch_operands = 0 : i64, tpu.core_type = #tpu.core_type<tc>, window_params = [{transform_indices = @transform_0, window_bounds = array<i64: 16, 3>}, {transform_indices = @transform_1, window_bounds = array<i64: 3, 16>}, {transform_indices = @transform_2, window_bounds = array<i64: 1, 16>}, {transform_indices = @transform_3, window_bounds = array<i64: 1, 16>}, {transform_indices = @transform_4, window_bounds = array<i64: 1, 16>}, {transform_indices = @transform_5, window_bounds = array<i64: 16, 16>}]} {
    %c0 = arith.constant 0 : index
    %c0_0 = arith.constant 0 : index
    %0 = vector.load %arg2[%c0, %c0_0] : memref<16x3xbf16, #tpu.memory_space<vmem>>, vector<16x3xbf16>
    %c0_1 = arith.constant 0 : index
    %c0_2 = arith.constant 0 : index
    %1 = vector.load %arg3[%c0_1, %c0_2] : memref<3x16xbf16, #tpu.memory_space<vmem>>, vector<3x16xbf16>
    %cst = arith.constant dense<0.000000e+00> : vector<16x16xf32>
    %2 = tpu.matmul %0, %1, %cst {dimension_numbers = #tpu.dot_dimension_numbers<[1], [0], [0], [1], [0, 0, 1, 1], [], []>} : vector<16x3xbf16>, vector<3x16xbf16>, vector<16x16xf32> -> vector<16x16xf32>
    %c0_3 = arith.constant 0 : index
    %c0_4 = arith.constant 0 : index
    %3 = vector.load %arg4[%c0_3, %c0_4] : memref<1x16xf32, #tpu.memory_space<vmem>>, vector<1x16xf32>
    %4 = vector.broadcast %3 : vector<1x16xf32> to vector<16x16xf32>
    %5 = arith.addf %2, %4 : vector<16x16xf32>
    %cst_5 = arith.constant dense<0.000000e+00> : vector<16xf32>
    %6 = vector.multi_reduction <add>, %5, %cst_5 [1] : vector<16x16xf32> to vector<16xf32>
    %7 = vector.shape_cast %6 : vector<16xf32> to vector<16x1xf32>
    %cst_6 = arith.constant 1.600000e+01 : f32
    %8 = vector.broadcast %cst_6 : f32 to vector<16x1xf32>
    %9 = arith.divf %7, %8 : vector<16x1xf32>
    %10 = vector.broadcast %9 : vector<16x1xf32> to vector<16x16xf32>
    %11 = arith.subf %5, %10 : vector<16x16xf32>
    %12 = arith.mulf %11, %11 : vector<16x16xf32>
    %cst_7 = arith.constant dense<0.000000e+00> : vector<16xf32>
    %13 = vector.multi_reduction <add>, %12, %cst_7 [1] : vector<16x16xf32> to vector<16xf32>
    %14 = vector.shape_cast %13 : vector<16xf32> to vector<16x1xf32>
    %cst_8 = arith.constant 1.600000e+01 : f32
    %15 = vector.broadcast %cst_8 : f32 to vector<16x1xf32>
    %16 = arith.divf %14, %15 : vector<16x1xf32>
    %17 = vector.broadcast %9 : vector<16x1xf32> to vector<16x16xf32>
    %18 = arith.subf %5, %17 : vector<16x16xf32>
    %cst_9 = arith.constant 9.99999974E-6 : f32
    %19 = vector.broadcast %cst_9 : f32 to vector<16x1xf32>
    %20 = arith.addf %16, %19 : vector<16x1xf32>
    %21 = math.rsqrt %20 : vector<16x1xf32>
    %22 = vector.broadcast %21 : vector<16x1xf32> to vector<16x16xf32>
    %23 = arith.mulf %18, %22 : vector<16x16xf32>
    %c0_10 = arith.constant 0 : index
    %c0_11 = arith.constant 0 : index
    %24 = vector.load %arg5[%c0_10, %c0_11] : memref<1x16xf32, #tpu.memory_space<vmem>>, vector<1x16xf32>
    %25 = vector.broadcast %24 : vector<1x16xf32> to vector<16x16xf32>
    %26 = arith.mulf %23, %25 : vector<16x16xf32>
    %c0_12 = arith.constant 0 : index
    %c0_13 = arith.constant 0 : index
    %27 = vector.load %arg6[%c0_12, %c0_13] : memref<1x16xf32, #tpu.memory_space<vmem>>, vector<1x16xf32>
    %28 = vector.broadcast %27 : vector<1x16xf32> to vector<16x16xf32>
    %29 = arith.addf %26, %28 : vector<16x16xf32>
    %30 = arith.truncf %29 : vector<16x16xf32> to vector<16x16xbf16>
    %c0_14 = arith.constant 0 : index
    %c0_15 = arith.constant 0 : index
    %31 = vector.load %arg7[%c0_14, %c0_15] : memref<16x16xbf16, #tpu.memory_space<vmem>>, vector<16x16xbf16>
    tpu.vector_store %arg7[%c0_14, %c0_15], %30 {strides = array<i32>} : memref<16x16xbf16, #tpu.memory_space<vmem>>, vector<16x16xbf16>,
    return
  }
  func.func @transform_0(%arg0: i32, %arg1: i32) -> (i32, i32) {
    %c0_i32 = arith.constant 0 : i32
    %c0_i32_0 = arith.constant 0 : i32
    return %arg0, %c0_i32 : i32, i32
  }
  func.func @transform_1(%arg0: i32, %arg1: i32) -> (i32, i32) {
    %c0_i32 = arith.constant 0 : i32
    %c0_i32_0 = arith.constant 0 : i32
    return %c0_i32, %arg1 : i32, i32
  }
  func.func @transform_2(%arg0: i32, %arg1: i32) -> (i32, i32) {
    %c0_i32 = arith.constant 0 : i32
    %c0_i32_0 = arith.constant 0 : i32
    return %c0_i32, %arg1 : i32, i32
  }
  func.func @transform_3(%arg0: i32, %arg1: i32) -> (i32, i32) {
    %c0_i32 = arith.constant 0 : i32
    %c0_i32_0 = arith.constant 0 : i32
    return %c0_i32, %arg1 : i32, i32
  }
  func.func @transform_4(%arg0: i32, %arg1: i32) -> (i32, i32) {
    %c0_i32 = arith.constant 0 : i32
    %c0_i32_0 = arith.constant 0 : i32
    return %c0_i32, %arg1 : i32, i32
  }
  func.func @transform_5(%arg0: i32, %arg1: i32) -> (i32, i32) {
    %c0_i32 = arith.constant 0 : i32
    return %arg0, %arg1 : i32, i32
  }
}

module attributes {stable_mosaic.version = 11 : i64} {
  func.func @_linear_kernel_1k(%arg0: i32, %arg1: i32, %arg2: memref<16x50xbf16, #tpu.memory_space<vmem>>, %arg3: memref<50x16xbf16, #tpu.memory_space<vmem>>, %arg4: memref<1x16xf32, #tpu.memory_space<vmem>>, %arg5: memref<1x16xf32, #tpu.memory_space<vmem>>, %arg6: memref<1x16xf32, #tpu.memory_space<vmem>>, %arg7: memref<16x16xbf16, #tpu.memory_space<vmem>>) attributes {dimension_semantics = [#tpu.dimension_semantics<parallel>, #tpu.dimension_semantics<parallel>], iteration_bounds = array<i64: 1, 1>, scalar_prefetch = 0 : i64, scratch_operands = 0 : i64, tpu.core_type = #tpu.core_type<tc>, window_params = [{transform_indices = @transform_0, window_bounds = array<i64: 16, 50>}, {transform_indices = @transform_1, window_bounds = array<i64: 50, 16>}, {transform_indices = @transform_2, window_bounds = array<i64: 1, 16>}, {transform_indices = @transform_3, window_bounds = array<i64: 1, 16>}, {transform_indices = @transform_4, window_bounds = array<i64: 1, 16>}, {transform_indices = @transform_5, window_bounds = array<i64: 16, 16>}]} {
    %c0 = arith.constant 0 : index
    %c0_0 = arith.constant 0 : index
    %0 = vector.load %arg2[%c0, %c0_0] : memref<16x50xbf16, #tpu.memory_space<vmem>>, vector<16x50xbf16>
    %c0_1 = arith.constant 0 : index
    %c0_2 = arith.constant 0 : index
    %1 = vector.load %arg3[%c0_1, %c0_2] : memref<50x16xbf16, #tpu.memory_space<vmem>>, vector<50x16xbf16>
    %cst = arith.constant dense<0.000000e+00> : vector<16x16xf32>
    %2 = tpu.matmul %0, %1, %cst {dimension_numbers = #tpu.dot_dimension_numbers<[1], [0], [0], [1], [0, 0, 1, 1], [], []>} : vector<16x50xbf16>, vector<50x16xbf16>, vector<16x16xf32> -> vector<16x16xf32>
    %c0_3 = arith.constant 0 : index
    %c0_4 = arith.constant 0 : index
    %3 = vector.load %arg4[%c0_3, %c0_4] : memref<1x16xf32, #tpu.memory_space<vmem>>, vector<1x16xf32>
    %4 = vector.broadcast %3 : vector<1x16xf32> to vector<16x16xf32>
    %5 = arith.addf %2, %4 : vector<16x16xf32>
    %cst_5 = arith.constant dense<0.000000e+00> : vector<16xf32>
    %6 = vector.multi_reduction <add>, %5, %cst_5 [1] : vector<16x16xf32> to vector<16xf32>
    %7 = vector.shape_cast %6 : vector<16xf32> to vector<16x1xf32>
    %cst_6 = arith.constant 1.600000e+01 : f32
    %8 = vector.broadcast %cst_6 : f32 to vector<16x1xf32>
    %9 = arith.divf %7, %8 : vector<16x1xf32>
    %10 = vector.broadcast %9 : vector<16x1xf32> to vector<16x16xf32>
    %11 = arith.subf %5, %10 : vector<16x16xf32>
    %12 = arith.mulf %11, %11 : vector<16x16xf32>
    %cst_7 = arith.constant dense<0.000000e+00> : vector<16xf32>
    %13 = vector.multi_reduction <add>, %12, %cst_7 [1] : vector<16x16xf32> to vector<16xf32>
    %14 = vector.shape_cast %13 : vector<16xf32> to vector<16x1xf32>
    %cst_8 = arith.constant 1.600000e+01 : f32
    %15 = vector.broadcast %cst_8 : f32 to vector<16x1xf32>
    %16 = arith.divf %14, %15 : vector<16x1xf32>
    %17 = vector.broadcast %9 : vector<16x1xf32> to vector<16x16xf32>
    %18 = arith.subf %5, %17 : vector<16x16xf32>
    %cst_9 = arith.constant 9.99999974E-6 : f32
    %19 = vector.broadcast %cst_9 : f32 to vector<16x1xf32>
    %20 = arith.addf %16, %19 : vector<16x1xf32>
    %21 = math.rsqrt %20 : vector<16x1xf32>
    %22 = vector.broadcast %21 : vector<16x1xf32> to vector<16x16xf32>
    %23 = arith.mulf %18, %22 : vector<16x16xf32>
    %c0_10 = arith.constant 0 : index
    %c0_11 = arith.constant 0 : index
    %24 = vector.load %arg5[%c0_10, %c0_11] : memref<1x16xf32, #tpu.memory_space<vmem>>, vector<1x16xf32>
    %25 = vector.broadcast %24 : vector<1x16xf32> to vector<16x16xf32>
    %26 = arith.mulf %23, %25 : vector<16x16xf32>
    %c0_12 = arith.constant 0 : index
    %c0_13 = arith.constant 0 : index
    %27 = vector.load %arg6[%c0_12, %c0_13] : memref<1x16xf32, #tpu.memory_space<vmem>>, vector<1x16xf32>
    %28 = vector.broadcast %27 : vector<1x16xf32> to vector<16x16xf32>
    %29 = arith.addf %26, %28 : vector<16x16xf32>
    %30 = arith.truncf %29 : vector<16x16xf32> to vector<16x16xbf16>
    %c0_14 = arith.constant 0 : index
    %c0_15 = arith.constant 0 : index
    %31 = vector.load %arg7[%c0_14, %c0_15] : memref<16x16xbf16, #tpu.memory_space<vmem>>, vector<16x16xbf16>
    tpu.vector_store %arg7[%c0_14, %c0_15], %30 {strides = array<i32>} : memref<16x16xbf16, #tpu.memory_space<vmem>>, vector<16x16xbf16>,
    return
  }
  func.func @transform_0(%arg0: i32, %arg1: i32) -> (i32, i32) {
    %c0_i32 = arith.constant 0 : i32
    %c0_i32_0 = arith.constant 0 : i32
    return %arg0, %c0_i32 : i32, i32
  }
  func.func @transform_1(%arg0: i32, %arg1: i32) -> (i32, i32) {
    %c0_i32 = arith.constant 0 : i32
    %c0_i32_0 = arith.constant 0 : i32
    return %c0_i32, %arg1 : i32, i32
  }
  func.func @transform_2(%arg0: i32, %arg1: i32) -> (i32, i32) {
    %c0_i32 = arith.constant 0 : i32
    %c0_i32_0 = arith.constant 0 : i32
    return %c0_i32, %arg1 : i32, i32
  }
  func.func @transform_3(%arg0: i32, %arg1: i32) -> (i32, i32) {
    %c0_i32 = arith.constant 0 : i32
    %c0_i32_0 = arith.constant 0 : i32
    return %c0_i32, %arg1 : i32, i32
  }
  func.func @transform_4(%arg0: i32, %arg1: i32) -> (i32, i32) {
    %c0_i32 = arith.constant 0 : i32
    %c0_i32_0 = arith.constant 0 : i32
    return %c0_i32, %arg1 : i32, i32
  }
  func.func @transform_5(%arg0: i32, %arg1: i32) -> (i32, i32) {
    %c0_i32 = arith.constant 0 : i32
    return %arg0, %arg1 : i32, i32
  }
}

module attributes {stable_mosaic.version = 11 : i64} {
  func.func @_linear_kernel_1k(%arg0: i32, %arg1: i32, %arg2: memref<16x32xbf16, #tpu.memory_space<vmem>>, %arg3: memref<32x96xbf16, #tpu.memory_space<vmem>>, %arg4: memref<1x96xf32, #tpu.memory_space<vmem>>, %arg5: memref<16x96xbf16, #tpu.memory_space<vmem>>) attributes {dimension_semantics = [#tpu.dimension_semantics<parallel>, #tpu.dimension_semantics<parallel>], iteration_bounds = array<i64: 1, 1>, scalar_prefetch = 0 : i64, scratch_operands = 0 : i64, tpu.core_type = #tpu.core_type<tc>, window_params = [{transform_indices = @transform_0, window_bounds = array<i64: 16, 32>}, {transform_indices = @transform_1, window_bounds = array<i64: 32, 96>}, {transform_indices = @transform_2, window_bounds = array<i64: 1, 96>}, {transform_indices = @transform_3, window_bounds = array<i64: 16, 96>}]} {
    %c0 = arith.constant 0 : index
    %c0_0 = arith.constant 0 : index
    %0 = vector.load %arg2[%c0, %c0_0] : memref<16x32xbf16, #tpu.memory_space<vmem>>, vector<16x32xbf16>
    %c0_1 = arith.constant 0 : index
    %c0_2 = arith.constant 0 : index
    %1 = vector.load %arg3[%c0_1, %c0_2] : memref<32x96xbf16, #tpu.memory_space<vmem>>, vector<32x96xbf16>
    %cst = arith.constant dense<0.000000e+00> : vector<16x96xf32>
    %2 = tpu.matmul %0, %1, %cst {dimension_numbers = #tpu.dot_dimension_numbers<[1], [0], [0], [1], [0, 0, 1, 1], [], []>} : vector<16x32xbf16>, vector<32x96xbf16>, vector<16x96xf32> -> vector<16x96xf32>
    %c0_3 = arith.constant 0 : index
    %c0_4 = arith.constant 0 : index
    %3 = vector.load %arg4[%c0_3, %c0_4] : memref<1x96xf32, #tpu.memory_space<vmem>>, vector<1x96xf32>
    %4 = vector.broadcast %3 : vector<1x96xf32> to vector<16x96xf32>
    %5 = arith.addf %2, %4 : vector<16x96xf32>
    %6 = arith.truncf %5 : vector<16x96xf32> to vector<16x96xbf16>
    %c0_5 = arith.constant 0 : index
    %c0_6 = arith.constant 0 : index
    %7 = vector.load %arg5[%c0_5, %c0_6] : memref<16x96xbf16, #tpu.memory_space<vmem>>, vector<16x96xbf16>
    tpu.vector_store %arg5[%c0_5, %c0_6], %6 {strides = array<i32>} : memref<16x96xbf16, #tpu.memory_space<vmem>>, vector<16x96xbf16>,
    return
  }
  func.func @transform_0(%arg0: i32, %arg1: i32) -> (i32, i32) {
    %c0_i32 = arith.constant 0 : i32
    %c0_i32_0 = arith.constant 0 : i32
    return %arg0, %c0_i32 : i32, i32
  }
  func.func @transform_1(%arg0: i32, %arg1: i32) -> (i32, i32) {
    %c0_i32 = arith.constant 0 : i32
    %c0_i32_0 = arith.constant 0 : i32
    return %c0_i32, %arg1 : i32, i32
  }
  func.func @transform_2(%arg0: i32, %arg1: i32) -> (i32, i32) {
    %c0_i32 = arith.constant 0 : i32
    %c0_i32_0 = arith.constant 0 : i32
    return %c0_i32, %arg1 : i32, i32
  }
  func.func @transform_3(%arg0: i32, %arg1: i32) -> (i32, i32) {
    %c0_i32 = arith.constant 0 : i32
    return %arg0, %arg1 : i32, i32
  }
}

module attributes {stable_mosaic.version = 11 : i64} {
  func.func @_add_ln_kernel(%arg0: i32, %arg1: i32, %arg2: memref<1x8x32xbf16, #tpu.memory_space<vmem>>, %arg3: memref<8x32xf32, #tpu.memory_space<vmem>>, %arg4: memref<1x32xf32, #tpu.memory_space<vmem>>, %arg5: memref<1x32xf32, #tpu.memory_space<vmem>>, %arg6: memref<1x8x32xbf16, #tpu.memory_space<vmem>>) attributes {dimension_semantics = [#tpu.dimension_semantics<parallel>, #tpu.dimension_semantics<parallel>], iteration_bounds = array<i64: 2, 1>, scalar_prefetch = 0 : i64, scratch_operands = 0 : i64, tpu.core_type = #tpu.core_type<tc>, window_params = [{transform_indices = @transform_0, window_bounds = array<i64: 1, 8, 32>}, {transform_indices = @transform_1, window_bounds = array<i64: 8, 32>}, {pipeline_mode = #tpu.pipeline_mode<synchronous>, transform_indices = @transform_2, window_bounds = array<i64: 1, 32>}, {pipeline_mode = #tpu.pipeline_mode<synchronous>, transform_indices = @transform_3, window_bounds = array<i64: 1, 32>}, {transform_indices = @transform_4, window_bounds = array<i64: 1, 8, 32>}]} {
    %c0 = arith.constant 0 : index
    %c0_0 = arith.constant 0 : index
    %c0_1 = arith.constant 0 : index
    %0 = vector.load %arg2[%c0, %c0_0, %c0_1] : memref<1x8x32xbf16, #tpu.memory_space<vmem>>, vector<1x8x32xbf16>
    %1 = arith.extf %0 : vector<1x8x32xbf16> to vector<1x8x32xf32>
    %c0_2 = arith.constant 0 : index
    %c0_3 = arith.constant 0 : index
    %2 = vector.load %arg3[%c0_2, %c0_3] : memref<8x32xf32, #tpu.memory_space<vmem>>, vector<8x32xf32>
    %3 = vector.shape_cast %2 : vector<8x32xf32> to vector<1x8x32xf32>
    %4 = arith.addf %1, %3 : vector<1x8x32xf32>
    %cst = arith.constant dense<0.000000e+00> : vector<1x8xf32>
    %5 = vector.multi_reduction <add>, %4, %cst [2] : vector<1x8x32xf32> to vector<1x8xf32>
    %6 = vector.shape_cast %5 : vector<1x8xf32> to vector<1x8x1xf32>
    %cst_4 = arith.constant 3.200000e+01 : f32
    %7 = vector.broadcast %cst_4 : f32 to vector<1x8x1xf32>
    %8 = arith.divf %6, %7 : vector<1x8x1xf32>
    %9 = vector.broadcast %8 : vector<1x8x1xf32> to vector<1x8x32xf32>
    %10 = arith.subf %4, %9 : vector<1x8x32xf32>
    %11 = arith.mulf %10, %10 : vector<1x8x32xf32>
    %cst_5 = arith.constant dense<0.000000e+00> : vector<1x8xf32>
    %12 = vector.multi_reduction <add>, %11, %cst_5 [2] : vector<1x8x32xf32> to vector<1x8xf32>
    %13 = vector.shape_cast %12 : vector<1x8xf32> to vector<1x8x1xf32>
    %cst_6 = arith.constant 3.200000e+01 : f32
    %14 = vector.broadcast %cst_6 : f32 to vector<1x8x1xf32>
    %15 = arith.divf %13, %14 : vector<1x8x1xf32>
    %16 = vector.broadcast %8 : vector<1x8x1xf32> to vector<1x8x32xf32>
    %17 = arith.subf %4, %16 : vector<1x8x32xf32>
    %cst_7 = arith.constant 9.99999996E-13 : f32
    %18 = vector.broadcast %cst_7 : f32 to vector<1x8x1xf32>
    %19 = arith.addf %15, %18 : vector<1x8x1xf32>
    %20 = math.rsqrt %19 : vector<1x8x1xf32>
    %21 = vector.broadcast %20 : vector<1x8x1xf32> to vector<1x8x32xf32>
    %22 = arith.mulf %17, %21 : vector<1x8x32xf32>
    %c0_8 = arith.constant 0 : index
    %c0_9 = arith.constant 0 : index
    %23 = vector.load %arg4[%c0_8, %c0_9] : memref<1x32xf32, #tpu.memory_space<vmem>>, vector<1x32xf32>
    %24 = vector.shape_cast %23 : vector<1x32xf32> to vector<1x1x32xf32>
    %25 = vector.broadcast %24 : vector<1x1x32xf32> to vector<1x8x32xf32>
    %26 = arith.mulf %22, %25 : vector<1x8x32xf32>
    %c0_10 = arith.constant 0 : index
    %c0_11 = arith.constant 0 : index
    %27 = vector.load %arg5[%c0_10, %c0_11] : memref<1x32xf32, #tpu.memory_space<vmem>>, vector<1x32xf32>
    %28 = vector.shape_cast %27 : vector<1x32xf32> to vector<1x1x32xf32>
    %29 = vector.broadcast %28 : vector<1x1x32xf32> to vector<1x8x32xf32>
    %30 = arith.addf %26, %29 : vector<1x8x32xf32>
    %31 = arith.truncf %30 : vector<1x8x32xf32> to vector<1x8x32xbf16>
    %c0_12 = arith.constant 0 : index
    %c0_13 = arith.constant 0 : index
    %c0_14 = arith.constant 0 : index
    %32 = vector.load %arg6[%c0_12, %c0_13, %c0_14] : memref<1x8x32xbf16, #tpu.memory_space<vmem>>, vector<1x8x32xbf16>
    tpu.vector_store %arg6[%c0_12, %c0_13, %c0_14], %31 {strides = array<i32>} : memref<1x8x32xbf16, #tpu.memory_space<vmem>>, vector<1x8x32xbf16>,
    return
  }
  func.func @transform_0(%arg0: i32, %arg1: i32) -> (i32, i32, i32) {
    %c0_i32 = arith.constant 0 : i32
    %c0_i32_0 = arith.constant 0 : i32
    return %arg0, %arg1, %c0_i32 : i32, i32, i32
  }
  func.func @transform_1(%arg0: i32, %arg1: i32) -> (i32, i32) {
    %c0_i32 = arith.constant 0 : i32
    %c0_i32_0 = arith.constant 0 : i32
    return %arg1, %c0_i32 : i32, i32
  }
  func.func @transform_2(%arg0: i32, %arg1: i32) -> (i32, i32) {
    %c0_i32 = arith.constant 0 : i32
    %c0_i32_0 = arith.constant 0 : i32
    %c0_i32_1 = arith.constant 0 : i32
    return %c0_i32, %c0_i32_0 : i32, i32
  }
  func.func @transform_3(%arg0: i32, %arg1: i32) -> (i32, i32) {
    %c0_i32 = arith.constant 0 : i32
    %c0_i32_0 = arith.constant 0 : i32
    %c0_i32_1 = arith.constant 0 : i32
    return %c0_i32, %c0_i32_0 : i32, i32
  }
  func.func @transform_4(%arg0: i32, %arg1: i32) -> (i32, i32, i32) {
    %c0_i32 = arith.constant 0 : i32
    %c0_i32_0 = arith.constant 0 : i32
    return %arg0, %arg1, %c0_i32 : i32, i32, i32
  }
}

module attributes {stable_mosaic.version = 11 : i64} {
  func.func @_attention_kernel(%arg0: i32, %arg1: memref<8x96xbf16, #tpu.memory_space<vmem>>, %arg2: memref<1x1x8xf32, #tpu.memory_space<vmem>>, %arg3: memref<8x32xbf16, #tpu.memory_space<vmem>>) attributes {dimension_semantics = [#tpu.dimension_semantics<parallel>], iteration_bounds = array<i64: 2>, scalar_prefetch = 0 : i64, scratch_operands = 0 : i64, tpu.core_type = #tpu.core_type<tc>, window_params = [{transform_indices = @transform_0, window_bounds = array<i64: 8, 96>}, {transform_indices = @transform_1, window_bounds = array<i64: 1, 1, 8>}, {transform_indices = @transform_2, window_bounds = array<i64: 8, 32>}]} {
    %c0 = arith.constant 0 : index
    %c0_0 = arith.constant 0 : index
    %c0_1 = arith.constant 0 : index
    %0 = vector.load %arg2[%c0, %c0_0, %c0_1] : memref<1x1x8xf32, #tpu.memory_space<vmem>>, vector<1x1x8xf32>
    %1 = vector.shape_cast %0 : vector<1x1x8xf32> to vector<1x8xf32>
    %c0_2 = arith.constant 0 : index
    %c0_3 = arith.constant 0 : index
    %2 = vector.load %arg1[%c0_2, %c0_3] : memref<8x96xbf16, #tpu.memory_space<vmem>>, vector<8x8xbf16>
    %c0_4 = arith.constant 0 : index
    %c32 = arith.constant 32 : index
    %3 = vector.load %arg1[%c0_4, %c32] : memref<8x96xbf16, #tpu.memory_space<vmem>>, vector<8x8xbf16>
    %c0_5 = arith.constant 0 : index
    %c64 = arith.constant 64 : index
    %4 = vector.load %arg1[%c0_5, %c64] : memref<8x96xbf16, #tpu.memory_space<vmem>>, vector<8x8xbf16>
    %cst = arith.constant dense<0.000000e+00> : vector<8x8xf32>
    %5 = tpu.matmul %2, %3, %cst {dimension_numbers = #tpu.dot_dimension_numbers<[1], [1], [0], [0], [0, 0, 1, 0], [], []>} : vector<8x8xbf16>, vector<8x8xbf16>, vector<8x8xf32> -> vector<8x8xf32>
    %6 = vector.broadcast %1 : vector<1x8xf32> to vector<8x8xf32>
    %7 = arith.addf %5, %6 : vector<8x8xf32>
    %cst_6 = arith.constant dense<0xFF800000> : vector<8xf32>
    %8 = vector.multi_reduction <maximumf>, %7, %cst_6 [1] : vector<8x8xf32> to vector<8xf32>
    %9 = vector.shape_cast %8 : vector<8xf32> to vector<8x1xf32>
    %10 = vector.broadcast %9 : vector<8x1xf32> to vector<8x8xf32>
    %11 = arith.subf %7, %10 : vector<8x8xf32>
    %12 = math.exp %11 : vector<8x8xf32>
    %cst_7 = arith.constant dense<0.000000e+00> : vector<8xf32>
    %13 = vector.multi_reduction <add>, %12, %cst_7 [1] : vector<8x8xf32> to vector<8xf32>
    %14 = vector.shape_cast %13 : vector<8xf32> to vector<8x1xf32>
    %15 = tpu.reciprocal %14 {approx = true} : vector<8x1xf32> -> vector<8x1xf32>
    %16 = vector.broadcast %15 : vector<8x1xf32> to vector<8x8xf32>
    %17 = arith.mulf %12, %16 : vector<8x8xf32>
    %18 = arith.truncf %17 : vector<8x8xf32> to vector<8x8xbf16>
    %cst_8 = arith.constant dense<0.000000e+00> : vector<8x8xf32>
    %19 = tpu.matmul %18, %4, %cst_8 {dimension_numbers = #tpu.dot_dimension_numbers<[1], [0], [0], [1], [0, 0, 1, 1], [], []>} : vector<8x8xbf16>, vector<8x8xbf16>, vector<8x8xf32> -> vector<8x8xf32>
    %20 = arith.truncf %19 : vector<8x8xf32> to vector<8x8xbf16>
    %c0_9 = arith.constant 0 : index
    %c0_10 = arith.constant 0 : index
    %21 = vector.load %arg3[%c0_9, %c0_10] : memref<8x32xbf16, #tpu.memory_space<vmem>>, vector<8x8xbf16>
    tpu.vector_store %arg3[%c0_9, %c0_10], %20 {strides = array<i32>} : memref<8x32xbf16, #tpu.memory_space<vmem>>, vector<8x8xbf16>,
    %c0_11 = arith.constant 0 : index
    %c8 = arith.constant 8 : index
    %22 = vector.load %arg1[%c0_11, %c8] : memref<8x96xbf16, #tpu.memory_space<vmem>>, vector<8x8xbf16>
    %c0_12 = arith.constant 0 : index
    %c40 = arith.constant 40 : index
    %23 = vector.load %arg1[%c0_12, %c40] : memref<8x96xbf16, #tpu.memory_space<vmem>>, vector<8x8xbf16>
    %c0_13 = arith.constant 0 : index
    %c72 = arith.constant 72 : index
    %24 = vector.load %arg1[%c0_13, %c72] : memref<8x96xbf16, #tpu.memory_space<vmem>>, vector<8x8xbf16>
    %cst_14 = arith.constant dense<0.000000e+00> : vector<8x8xf32>
    %25 = tpu.matmul %22, %23, %cst_14 {dimension_numbers = #tpu.dot_dimension_numbers<[1], [1], [0], [0], [0, 0, 1, 0], [], []>} : vector<8x8xbf16>, vector<8x8xbf16>, vector<8x8xf32> -> vector<8x8xf32>
    %26 = vector.broadcast %1 : vector<1x8xf32> to vector<8x8xf32>
    %27 = arith.addf %25, %26 : vector<8x8xf32>
    %cst_15 = arith.constant dense<0xFF800000> : vector<8xf32>
    %28 = vector.multi_reduction <maximumf>, %27, %cst_15 [1] : vector<8x8xf32> to vector<8xf32>
    %29 = vector.shape_cast %28 : vector<8xf32> to vector<8x1xf32>
    %30 = vector.broadcast %29 : vector<8x1xf32> to vector<8x8xf32>
    %31 = arith.subf %27, %30 : vector<8x8xf32>
    %32 = math.exp %31 : vector<8x8xf32>
    %cst_16 = arith.constant dense<0.000000e+00> : vector<8xf32>
    %33 = vector.multi_reduction <add>, %32, %cst_16 [1] : vector<8x8xf32> to vector<8xf32>
    %34 = vector.shape_cast %33 : vector<8xf32> to vector<8x1xf32>
    %35 = tpu.reciprocal %34 {approx = true} : vector<8x1xf32> -> vector<8x1xf32>
    %36 = vector.broadcast %35 : vector<8x1xf32> to vector<8x8xf32>
    %37 = arith.mulf %32, %36 : vector<8x8xf32>
    %38 = arith.truncf %37 : vector<8x8xf32> to vector<8x8xbf16>
    %cst_17 = arith.constant dense<0.000000e+00> : vector<8x8xf32>
    %39 = tpu.matmul %38, %24, %cst_17 {dimension_numbers = #tpu.dot_dimension_numbers<[1], [0], [0], [1], [0, 0, 1, 1], [], []>} : vector<8x8xbf16>, vector<8x8xbf16>, vector<8x8xf32> -> vector<8x8xf32>
    %40 = arith.truncf %39 : vector<8x8xf32> to vector<8x8xbf16>
    %c0_18 = arith.constant 0 : index
    %c8_19 = arith.constant 8 : index
    %41 = vector.load %arg3[%c0_18, %c8_19] : memref<8x32xbf16, #tpu.memory_space<vmem>>, vector<8x8xbf16>
    tpu.vector_store %arg3[%c0_18, %c8_19], %40 {strides = array<i32>} : memref<8x32xbf16, #tpu.memory_space<vmem>>, vector<8x8xbf16>,
    %c0_20 = arith.constant 0 : index
    %c16 = arith.constant 16 : index
    %42 = vector.load %arg1[%c0_20, %c16] : memref<8x96xbf16, #tpu.memory_space<vmem>>, vector<8x8xbf16>
    %c0_21 = arith.constant 0 : index
    %c48 = arith.constant 48 : index
    %43 = vector.load %arg1[%c0_21, %c48] : memref<8x96xbf16, #tpu.memory_space<vmem>>, vector<8x8xbf16>
    %c0_22 = arith.constant 0 : index
    %c80 = arith.constant 80 : index
    %44 = vector.load %arg1[%c0_22, %c80] : memref<8x96xbf16, #tpu.memory_space<vmem>>, vector<8x8xbf16>
    %cst_23 = arith.constant dense<0.000000e+00> : vector<8x8xf32>
    %45 = tpu.matmul %42, %43, %cst_23 {dimension_numbers = #tpu.dot_dimension_numbers<[1], [1], [0], [0], [0, 0, 1, 0], [], []>} : vector<8x8xbf16>, vector<8x8xbf16>, vector<8x8xf32> -> vector<8x8xf32>
    %46 = vector.broadcast %1 : vector<1x8xf32> to vector<8x8xf32>
    %47 = arith.addf %45, %46 : vector<8x8xf32>
    %cst_24 = arith.constant dense<0xFF800000> : vector<8xf32>
    %48 = vector.multi_reduction <maximumf>, %47, %cst_24 [1] : vector<8x8xf32> to vector<8xf32>
    %49 = vector.shape_cast %48 : vector<8xf32> to vector<8x1xf32>
    %50 = vector.broadcast %49 : vector<8x1xf32> to vector<8x8xf32>
    %51 = arith.subf %47, %50 : vector<8x8xf32>
    %52 = math.exp %51 : vector<8x8xf32>
    %cst_25 = arith.constant dense<0.000000e+00> : vector<8xf32>
    %53 = vector.multi_reduction <add>, %52, %cst_25 [1] : vector<8x8xf32> to vector<8xf32>
    %54 = vector.shape_cast %53 : vector<8xf32> to vector<8x1xf32>
    %55 = tpu.reciprocal %54 {approx = true} : vector<8x1xf32> -> vector<8x1xf32>
    %56 = vector.broadcast %55 : vector<8x1xf32> to vector<8x8xf32>
    %57 = arith.mulf %52, %56 : vector<8x8xf32>
    %58 = arith.truncf %57 : vector<8x8xf32> to vector<8x8xbf16>
    %cst_26 = arith.constant dense<0.000000e+00> : vector<8x8xf32>
    %59 = tpu.matmul %58, %44, %cst_26 {dimension_numbers = #tpu.dot_dimension_numbers<[1], [0], [0], [1], [0, 0, 1, 1], [], []>} : vector<8x8xbf16>, vector<8x8xbf16>, vector<8x8xf32> -> vector<8x8xf32>
    %60 = arith.truncf %59 : vector<8x8xf32> to vector<8x8xbf16>
    %c0_27 = arith.constant 0 : index
    %c16_28 = arith.constant 16 : index
    %61 = vector.load %arg3[%c0_27, %c16_28] : memref<8x32xbf16, #tpu.memory_space<vmem>>, vector<8x8xbf16>
    tpu.vector_store %arg3[%c0_27, %c16_28], %60 {strides = array<i32>} : memref<8x32xbf16, #tpu.memory_space<vmem>>, vector<8x8xbf16>,
    %c0_29 = arith.constant 0 : index
    %c24 = arith.constant 24 : index
    %62 = vector.load %arg1[%c0_29, %c24] : memref<8x96xbf16, #tpu.memory_space<vmem>>, vector<8x8xbf16>
    %c0_30 = arith.constant 0 : index
    %c56 = arith.constant 56 : index
    %63 = vector.load %arg1[%c0_30, %c56] : memref<8x96xbf16, #tpu.memory_space<vmem>>, vector<8x8xbf16>
    %c0_31 = arith.constant 0 : index
    %c88 = arith.constant 88 : index
    %64 = vector.load %arg1[%c0_31, %c88] : memref<8x96xbf16, #tpu.memory_space<vmem>>, vector<8x8xbf16>
    %cst_32 = arith.constant dense<0.000000e+00> : vector<8x8xf32>
    %65 = tpu.matmul %62, %63, %cst_32 {dimension_numbers = #tpu.dot_dimension_numbers<[1], [1], [0], [0], [0, 0, 1, 0], [], []>} : vector<8x8xbf16>, vector<8x8xbf16>, vector<8x8xf32> -> vector<8x8xf32>
    %66 = vector.broadcast %1 : vector<1x8xf32> to vector<8x8xf32>
    %67 = arith.addf %65, %66 : vector<8x8xf32>
    %cst_33 = arith.constant dense<0xFF800000> : vector<8xf32>
    %68 = vector.multi_reduction <maximumf>, %67, %cst_33 [1] : vector<8x8xf32> to vector<8xf32>
    %69 = vector.shape_cast %68 : vector<8xf32> to vector<8x1xf32>
    %70 = vector.broadcast %69 : vector<8x1xf32> to vector<8x8xf32>
    %71 = arith.subf %67, %70 : vector<8x8xf32>
    %72 = math.exp %71 : vector<8x8xf32>
    %cst_34 = arith.constant dense<0.000000e+00> : vector<8xf32>
    %73 = vector.multi_reduction <add>, %72, %cst_34 [1] : vector<8x8xf32> to vector<8xf32>
    %74 = vector.shape_cast %73 : vector<8xf32> to vector<8x1xf32>
    %75 = tpu.reciprocal %74 {approx = true} : vector<8x1xf32> -> vector<8x1xf32>
    %76 = vector.broadcast %75 : vector<8x1xf32> to vector<8x8xf32>
    %77 = arith.mulf %72, %76 : vector<8x8xf32>
    %78 = arith.truncf %77 : vector<8x8xf32> to vector<8x8xbf16>
    %cst_35 = arith.constant dense<0.000000e+00> : vector<8x8xf32>
    %79 = tpu.matmul %78, %64, %cst_35 {dimension_numbers = #tpu.dot_dimension_numbers<[1], [0], [0], [1], [0, 0, 1, 1], [], []>} : vector<8x8xbf16>, vector<8x8xbf16>, vector<8x8xf32> -> vector<8x8xf32>
    %80 = arith.truncf %79 : vector<8x8xf32> to vector<8x8xbf16>
    %c0_36 = arith.constant 0 : index
    %c24_37 = arith.constant 24 : index
    %81 = vector.load %arg3[%c0_36, %c24_37] : memref<8x32xbf16, #tpu.memory_space<vmem>>, vector<8x8xbf16>
    tpu.vector_store %arg3[%c0_36, %c24_37], %80 {strides = array<i32>} : memref<8x32xbf16, #tpu.memory_space<vmem>>, vector<8x8xbf16>,
    return
  }
  func.func @transform_0(%arg0: i32) -> (i32, i32) {
    %c0_i32 = arith.constant 0 : i32
    %c0_i32_0 = arith.constant 0 : i32
    return %arg0, %c0_i32 : i32, i32
  }
  func.func @transform_1(%arg0: i32) -> (i32, i32, i32) {
    %c0_i32 = arith.constant 0 : i32
    %c0_i32_0 = arith.constant 0 : i32
    %c0_i32_1 = arith.constant 0 : i32
    return %arg0, %c0_i32, %c0_i32_0 : i32, i32, i32
  }
  func.func @transform_2(%arg0: i32) -> (i32, i32) {
    %c0_i32 = arith.constant 0 : i32
    %c0_i32_0 = arith.constant 0 : i32
    return %arg0, %c0_i32 : i32, i32
  }
}

module attributes {stable_mosaic.version = 11 : i64} {
  func.func @_linear_kernel_1k(%arg0: i32, %arg1: i32, %arg2: memref<16x32xbf16, #tpu.memory_space<vmem>>, %arg3: memref<32x32xbf16, #tpu.memory_space<vmem>>, %arg4: memref<1x32xf32, #tpu.memory_space<vmem>>, %arg5: memref<16x32xbf16, #tpu.memory_space<vmem>>, %arg6: memref<1x32xf32, #tpu.memory_space<vmem>>, %arg7: memref<1x32xf32, #tpu.memory_space<vmem>>, %arg8: memref<16x32xbf16, #tpu.memory_space<vmem>>) attributes {dimension_semantics = [#tpu.dimension_semantics<parallel>, #tpu.dimension_semantics<parallel>], iteration_bounds = array<i64: 1, 1>, scalar_prefetch = 0 : i64, scratch_operands = 0 : i64, tpu.core_type = #tpu.core_type<tc>, window_params = [{transform_indices = @transform_0, window_bounds = array<i64: 16, 32>}, {transform_indices = @transform_1, window_bounds = array<i64: 32, 32>}, {transform_indices = @transform_2, window_bounds = array<i64: 1, 32>}, {transform_indices = @transform_3, window_bounds = array<i64: 16, 32>}, {transform_indices = @transform_4, window_bounds = array<i64: 1, 32>}, {transform_indices = @transform_5, window_bounds = array<i64: 1, 32>}, {transform_indices = @transform_6, window_bounds = array<i64: 16, 32>}]} {
    %c0 = arith.constant 0 : index
    %c0_0 = arith.constant 0 : index
    %0 = vector.load %arg2[%c0, %c0_0] : memref<16x32xbf16, #tpu.memory_space<vmem>>, vector<16x32xbf16>
    %c0_1 = arith.constant 0 : index
    %c0_2 = arith.constant 0 : index
    %1 = vector.load %arg3[%c0_1, %c0_2] : memref<32x32xbf16, #tpu.memory_space<vmem>>, vector<32x32xbf16>
    %cst = arith.constant dense<0.000000e+00> : vector<16x32xf32>
    %2 = tpu.matmul %0, %1, %cst {dimension_numbers = #tpu.dot_dimension_numbers<[1], [0], [0], [1], [0, 0, 1, 1], [], []>} : vector<16x32xbf16>, vector<32x32xbf16>, vector<16x32xf32> -> vector<16x32xf32>
    %c0_3 = arith.constant 0 : index
    %c0_4 = arith.constant 0 : index
    %3 = vector.load %arg4[%c0_3, %c0_4] : memref<1x32xf32, #tpu.memory_space<vmem>>, vector<1x32xf32>
    %4 = vector.broadcast %3 : vector<1x32xf32> to vector<16x32xf32>
    %5 = arith.addf %2, %4 : vector<16x32xf32>
    %c0_5 = arith.constant 0 : index
    %c0_6 = arith.constant 0 : index
    %6 = vector.load %arg5[%c0_5, %c0_6] : memref<16x32xbf16, #tpu.memory_space<vmem>>, vector<16x32xbf16>
    %7 = arith.extf %6 : vector<16x32xbf16> to vector<16x32xf32>
    %8 = arith.addf %5, %7 : vector<16x32xf32>
    %cst_7 = arith.constant dense<0.000000e+00> : vector<16xf32>
    %9 = vector.multi_reduction <add>, %8, %cst_7 [1] : vector<16x32xf32> to vector<16xf32>
    %10 = vector.shape_cast %9 : vector<16xf32> to vector<16x1xf32>
    %cst_8 = arith.constant 3.200000e+01 : f32
    %11 = vector.broadcast %cst_8 : f32 to vector<16x1xf32>
    %12 = arith.divf %10, %11 : vector<16x1xf32>
    %13 = vector.broadcast %12 : vector<16x1xf32> to vector<16x32xf32>
    %14 = arith.subf %8, %13 : vector<16x32xf32>
    %15 = arith.mulf %14, %14 : vector<16x32xf32>
    %cst_9 = arith.constant dense<0.000000e+00> : vector<16xf32>
    %16 = vector.multi_reduction <add>, %15, %cst_9 [1] : vector<16x32xf32> to vector<16xf32>
    %17 = vector.shape_cast %16 : vector<16xf32> to vector<16x1xf32>
    %cst_10 = arith.constant 3.200000e+01 : f32
    %18 = vector.broadcast %cst_10 : f32 to vector<16x1xf32>
    %19 = arith.divf %17, %18 : vector<16x1xf32>
    %20 = vector.broadcast %12 : vector<16x1xf32> to vector<16x32xf32>
    %21 = arith.subf %8, %20 : vector<16x32xf32>
    %cst_11 = arith.constant 9.99999996E-13 : f32
    %22 = vector.broadcast %cst_11 : f32 to vector<16x1xf32>
    %23 = arith.addf %19, %22 : vector<16x1xf32>
    %24 = math.rsqrt %23 : vector<16x1xf32>
    %25 = vector.broadcast %24 : vector<16x1xf32> to vector<16x32xf32>
    %26 = arith.mulf %21, %25 : vector<16x32xf32>
    %c0_12 = arith.constant 0 : index
    %c0_13 = arith.constant 0 : index
    %27 = vector.load %arg6[%c0_12, %c0_13] : memref<1x32xf32, #tpu.memory_space<vmem>>, vector<1x32xf32>
    %28 = vector.broadcast %27 : vector<1x32xf32> to vector<16x32xf32>
    %29 = arith.mulf %26, %28 : vector<16x32xf32>
    %c0_14 = arith.constant 0 : index
    %c0_15 = arith.constant 0 : index
    %30 = vector.load %arg7[%c0_14, %c0_15] : memref<1x32xf32, #tpu.memory_space<vmem>>, vector<1x32xf32>
    %31 = vector.broadcast %30 : vector<1x32xf32> to vector<16x32xf32>
    %32 = arith.addf %29, %31 : vector<16x32xf32>
    %33 = arith.truncf %32 : vector<16x32xf32> to vector<16x32xbf16>
    %c0_16 = arith.constant 0 : index
    %c0_17 = arith.constant 0 : index
    %34 = vector.load %arg8[%c0_16, %c0_17] : memref<16x32xbf16, #tpu.memory_space<vmem>>, vector<16x32xbf16>
    tpu.vector_store %arg8[%c0_16, %c0_17], %33 {strides = array<i32>} : memref<16x32xbf16, #tpu.memory_space<vmem>>, vector<16x32xbf16>,
    return
  }
  func.func @transform_0(%arg0: i32, %arg1: i32) -> (i32, i32) {
    %c0_i32 = arith.constant 0 : i32
    %c0_i32_0 = arith.constant 0 : i32
    return %arg0, %c0_i32 : i32, i32
  }
  func.func @transform_1(%arg0: i32, %arg1: i32) -> (i32, i32) {
    %c0_i32 = arith.constant 0 : i32
    %c0_i32_0 = arith.constant 0 : i32
    return %c0_i32, %arg1 : i32, i32
  }
  func.func @transform_2(%arg0: i32, %arg1: i32) -> (i32, i32) {
    %c0_i32 = arith.constant 0 : i32
    %c0_i32_0 = arith.constant 0 : i32
    return %c0_i32, %arg1 : i32, i32
  }
  func.func @transform_3(%arg0: i32, %arg1: i32) -> (i32, i32) {
    %c0_i32 = arith.constant 0 : i32
    return %arg0, %arg1 : i32, i32
  }
  func.func @transform_4(%arg0: i32, %arg1: i32) -> (i32, i32) {
    %c0_i32 = arith.constant 0 : i32
    %c0_i32_0 = arith.constant 0 : i32
    return %c0_i32, %arg1 : i32, i32
  }
  func.func @transform_5(%arg0: i32, %arg1: i32) -> (i32, i32) {
    %c0_i32 = arith.constant 0 : i32
    %c0_i32_0 = arith.constant 0 : i32
    return %c0_i32, %arg1 : i32, i32
  }
  func.func @transform_6(%arg0: i32, %arg1: i32) -> (i32, i32) {
    %c0_i32 = arith.constant 0 : i32
    return %arg0, %arg1 : i32, i32
  }
}

module attributes {stable_mosaic.version = 11 : i64} {
  func.func @_linear_kernel_1k(%arg0: i32, %arg1: i32, %arg2: memref<16x32xbf16, #tpu.memory_space<vmem>>, %arg3: memref<32x128xbf16, #tpu.memory_space<vmem>>, %arg4: memref<1x128xf32, #tpu.memory_space<vmem>>, %arg5: memref<16x128xbf16, #tpu.memory_space<vmem>>) attributes {dimension_semantics = [#tpu.dimension_semantics<parallel>, #tpu.dimension_semantics<parallel>], iteration_bounds = array<i64: 1, 1>, scalar_prefetch = 0 : i64, scratch_operands = 0 : i64, tpu.core_type = #tpu.core_type<tc>, window_params = [{transform_indices = @transform_0, window_bounds = array<i64: 16, 32>}, {transform_indices = @transform_1, window_bounds = array<i64: 32, 128>}, {transform_indices = @transform_2, window_bounds = array<i64: 1, 128>}, {transform_indices = @transform_3, window_bounds = array<i64: 16, 128>}]} {
    %c0 = arith.constant 0 : index
    %c0_0 = arith.constant 0 : index
    %0 = vector.load %arg2[%c0, %c0_0] : memref<16x32xbf16, #tpu.memory_space<vmem>>, vector<16x32xbf16>
    %c0_1 = arith.constant 0 : index
    %c0_2 = arith.constant 0 : index
    %1 = vector.load %arg3[%c0_1, %c0_2] : memref<32x128xbf16, #tpu.memory_space<vmem>>, vector<32x128xbf16>
    %cst = arith.constant dense<0.000000e+00> : vector<16x128xf32>
    %2 = tpu.matmul %0, %1, %cst {dimension_numbers = #tpu.dot_dimension_numbers<[1], [0], [0], [1], [0, 0, 1, 1], [], []>} : vector<16x32xbf16>, vector<32x128xbf16>, vector<16x128xf32> -> vector<16x128xf32>
    %c0_3 = arith.constant 0 : index
    %c0_4 = arith.constant 0 : index
    %3 = vector.load %arg4[%c0_3, %c0_4] : memref<1x128xf32, #tpu.memory_space<vmem>>, vector<1x128xf32>
    %4 = vector.broadcast %3 : vector<1x128xf32> to vector<16x128xf32>
    %5 = arith.addf %2, %4 : vector<16x128xf32>
    %cst_5 = arith.constant 5.000000e-01 : f32
    %6 = vector.broadcast %cst_5 : f32 to vector<16x128xf32>
    %7 = arith.mulf %6, %5 : vector<16x128xf32>
    %cst_6 = arith.constant 4.471500e-02 : f32
    %8 = vector.broadcast %cst_6 : f32 to vector<16x128xf32>
    %9 = arith.mulf %8, %5 : vector<16x128xf32>
    %10 = arith.mulf %9, %5 : vector<16x128xf32>
    %11 = arith.mulf %10, %5 : vector<16x128xf32>
    %12 = arith.addf %5, %11 : vector<16x128xf32>
    %cst_7 = arith.constant 0.797884583 : f32
    %13 = vector.broadcast %cst_7 : f32 to vector<16x128xf32>
    %14 = arith.mulf %13, %12 : vector<16x128xf32>
    %15 = math.tanh %14 : vector<16x128xf32>
    %cst_8 = arith.constant 1.000000e+00 : f32
    %16 = vector.broadcast %cst_8 : f32 to vector<16x128xf32>
    %17 = arith.addf %16, %15 : vector<16x128xf32>
    %18 = arith.mulf %7, %17 : vector<16x128xf32>
    %19 = arith.truncf %18 : vector<16x128xf32> to vector<16x128xbf16>
    %c0_9 = arith.constant 0 : index
    %c0_10 = arith.constant 0 : index
    %20 = vector.load %arg5[%c0_9, %c0_10] : memref<16x128xbf16, #tpu.memory_space<vmem>>, vector<16x128xbf16>
    tpu.vector_store %arg5[%c0_9, %c0_10], %19 {strides = array<i32>} : memref<16x128xbf16, #tpu.memory_space<vmem>>, vector<16x128xbf16>,
    return
  }
  func.func @transform_0(%arg0: i32, %arg1: i32) -> (i32, i32) {
    %c0_i32 = arith.constant 0 : i32
    %c0_i32_0 = arith.constant 0 : i32
    return %arg0, %c0_i32 : i32, i32
  }
  func.func @transform_1(%arg0: i32, %arg1: i32) -> (i32, i32) {
    %c0_i32 = arith.constant 0 : i32
    %c0_i32_0 = arith.constant 0 : i32
    return %c0_i32, %arg1 : i32, i32
  }
  func.func @transform_2(%arg0: i32, %arg1: i32) -> (i32, i32) {
    %c0_i32 = arith.constant 0 : i32
    %c0_i32_0 = arith.constant 0 : i32
    return %c0_i32, %arg1 : i32, i32
  }
  func.func @transform_3(%arg0: i32, %arg1: i32) -> (i32, i32) {
    %c0_i32 = arith.constant 0 : i32
    return %arg0, %arg1 : i32, i32
  }
}

module attributes {stable_mosaic.version = 11 : i64} {
  func.func @_linear_kernel_1k(%arg0: i32, %arg1: i32, %arg2: memref<16x128xbf16, #tpu.memory_space<vmem>>, %arg3: memref<128x32xbf16, #tpu.memory_space<vmem>>, %arg4: memref<1x32xf32, #tpu.memory_space<vmem>>, %arg5: memref<16x32xbf16, #tpu.memory_space<vmem>>, %arg6: memref<1x32xf32, #tpu.memory_space<vmem>>, %arg7: memref<1x32xf32, #tpu.memory_space<vmem>>, %arg8: memref<16x32xbf16, #tpu.memory_space<vmem>>) attributes {dimension_semantics = [#tpu.dimension_semantics<parallel>, #tpu.dimension_semantics<parallel>], iteration_bounds = array<i64: 1, 1>, scalar_prefetch = 0 : i64, scratch_operands = 0 : i64, tpu.core_type = #tpu.core_type<tc>, window_params = [{transform_indices = @transform_0, window_bounds = array<i64: 16, 128>}, {transform_indices = @transform_1, window_bounds = array<i64: 128, 32>}, {transform_indices = @transform_2, window_bounds = array<i64: 1, 32>}, {transform_indices = @transform_3, window_bounds = array<i64: 16, 32>}, {transform_indices = @transform_4, window_bounds = array<i64: 1, 32>}, {transform_indices = @transform_5, window_bounds = array<i64: 1, 32>}, {transform_indices = @transform_6, window_bounds = array<i64: 16, 32>}]} {
    %c0 = arith.constant 0 : index
    %c0_0 = arith.constant 0 : index
    %0 = vector.load %arg2[%c0, %c0_0] : memref<16x128xbf16, #tpu.memory_space<vmem>>, vector<16x128xbf16>
    %c0_1 = arith.constant 0 : index
    %c0_2 = arith.constant 0 : index
    %1 = vector.load %arg3[%c0_1, %c0_2] : memref<128x32xbf16, #tpu.memory_space<vmem>>, vector<128x32xbf16>
    %cst = arith.constant dense<0.000000e+00> : vector<16x32xf32>
    %2 = tpu.matmul %0, %1, %cst {dimension_numbers = #tpu.dot_dimension_numbers<[1], [0], [0], [1], [0, 0, 1, 1], [], []>} : vector<16x128xbf16>, vector<128x32xbf16>, vector<16x32xf32> -> vector<16x32xf32>
    %c0_3 = arith.constant 0 : index
    %c0_4 = arith.constant 0 : index
    %3 = vector.load %arg4[%c0_3, %c0_4] : memref<1x32xf32, #tpu.memory_space<vmem>>, vector<1x32xf32>
    %4 = vector.broadcast %3 : vector<1x32xf32> to vector<16x32xf32>
    %5 = arith.addf %2, %4 : vector<16x32xf32>
    %c0_5 = arith.constant 0 : index
    %c0_6 = arith.constant 0 : index
    %6 = vector.load %arg5[%c0_5, %c0_6] : memref<16x32xbf16, #tpu.memory_space<vmem>>, vector<16x32xbf16>
    %7 = arith.extf %6 : vector<16x32xbf16> to vector<16x32xf32>
    %8 = arith.addf %5, %7 : vector<16x32xf32>
    %cst_7 = arith.constant dense<0.000000e+00> : vector<16xf32>
    %9 = vector.multi_reduction <add>, %8, %cst_7 [1] : vector<16x32xf32> to vector<16xf32>
    %10 = vector.shape_cast %9 : vector<16xf32> to vector<16x1xf32>
    %cst_8 = arith.constant 3.200000e+01 : f32
    %11 = vector.broadcast %cst_8 : f32 to vector<16x1xf32>
    %12 = arith.divf %10, %11 : vector<16x1xf32>
    %13 = vector.broadcast %12 : vector<16x1xf32> to vector<16x32xf32>
    %14 = arith.subf %8, %13 : vector<16x32xf32>
    %15 = arith.mulf %14, %14 : vector<16x32xf32>
    %cst_9 = arith.constant dense<0.000000e+00> : vector<16xf32>
    %16 = vector.multi_reduction <add>, %15, %cst_9 [1] : vector<16x32xf32> to vector<16xf32>
    %17 = vector.shape_cast %16 : vector<16xf32> to vector<16x1xf32>
    %cst_10 = arith.constant 3.200000e+01 : f32
    %18 = vector.broadcast %cst_10 : f32 to vector<16x1xf32>
    %19 = arith.divf %17, %18 : vector<16x1xf32>
    %20 = vector.broadcast %12 : vector<16x1xf32> to vector<16x32xf32>
    %21 = arith.subf %8, %20 : vector<16x32xf32>
    %cst_11 = arith.constant 9.99999996E-13 : f32
    %22 = vector.broadcast %cst_11 : f32 to vector<16x1xf32>
    %23 = arith.addf %19, %22 : vector<16x1xf32>
    %24 = math.rsqrt %23 : vector<16x1xf32>
    %25 = vector.broadcast %24 : vector<16x1xf32> to vector<16x32xf32>
    %26 = arith.mulf %21, %25 : vector<16x32xf32>
    %c0_12 = arith.constant 0 : index
    %c0_13 = arith.constant 0 : index
    %27 = vector.load %arg6[%c0_12, %c0_13] : memref<1x32xf32, #tpu.memory_space<vmem>>, vector<1x32xf32>
    %28 = vector.broadcast %27 : vector<1x32xf32> to vector<16x32xf32>
    %29 = arith.mulf %26, %28 : vector<16x32xf32>
    %c0_14 = arith.constant 0 : index
    %c0_15 = arith.constant 0 : index
    %30 = vector.load %arg7[%c0_14, %c0_15] : memref<1x32xf32, #tpu.memory_space<vmem>>, vector<1x32xf32>
    %31 = vector.broadcast %30 : vector<1x32xf32> to vector<16x32xf32>
    %32 = arith.addf %29, %31 : vector<16x32xf32>
    %33 = arith.truncf %32 : vector<16x32xf32> to vector<16x32xbf16>
    %c0_16 = arith.constant 0 : index
    %c0_17 = arith.constant 0 : index
    %34 = vector.load %arg8[%c0_16, %c0_17] : memref<16x32xbf16, #tpu.memory_space<vmem>>, vector<16x32xbf16>
    tpu.vector_store %arg8[%c0_16, %c0_17], %33 {strides = array<i32>} : memref<16x32xbf16, #tpu.memory_space<vmem>>, vector<16x32xbf16>,
    return
  }
  func.func @transform_0(%arg0: i32, %arg1: i32) -> (i32, i32) {
    %c0_i32 = arith.constant 0 : i32
    %c0_i32_0 = arith.constant 0 : i32
    return %arg0, %c0_i32 : i32, i32
  }
  func.func @transform_1(%arg0: i32, %arg1: i32) -> (i32, i32) {
    %c0_i32 = arith.constant 0 : i32
    %c0_i32_0 = arith.constant 0 : i32
    return %c0_i32, %arg1 : i32, i32
  }
  func.func @transform_2(%arg0: i32, %arg1: i32) -> (i32, i32) {
    %c0_i32 = arith.constant 0 : i32
    %c0_i32_0 = arith.constant 0 : i32
    return %c0_i32, %arg1 : i32, i32
  }
  func.func @transform_3(%arg0: i32, %arg1: i32) -> (i32, i32) {
    %c0_i32 = arith.constant 0 : i32
    return %arg0, %arg1 : i32, i32
  }
  func.func @transform_4(%arg0: i32, %arg1: i32) -> (i32, i32) {
    %c0_i32 = arith.constant 0 : i32
    %c0_i32_0 = arith.constant 0 : i32
    return %c0_i32, %arg1 : i32, i32
  }
  func.func @transform_5(%arg0: i32, %arg1: i32) -> (i32, i32) {
    %c0_i32 = arith.constant 0 : i32
    %c0_i32_0 = arith.constant 0 : i32
    return %c0_i32, %arg1 : i32, i32
  }
  func.func @transform_6(%arg0: i32, %arg1: i32) -> (i32, i32) {
    %c0_i32 = arith.constant 0 : i32
    return %arg0, %arg1 : i32, i32
  }
}

module attributes {stable_mosaic.version = 11 : i64} {
  func.func @_linear_kernel_1k(%arg0: i32, %arg1: i32, %arg2: memref<16x32xbf16, #tpu.memory_space<vmem>>, %arg3: memref<32x128xbf16, #tpu.memory_space<vmem>>, %arg4: memref<1x128xf32, #tpu.memory_space<vmem>>, %arg5: memref<16x128xf32, #tpu.memory_space<vmem>>) attributes {dimension_semantics = [#tpu.dimension_semantics<parallel>, #tpu.dimension_semantics<parallel>], iteration_bounds = array<i64: 1, 1>, scalar_prefetch = 0 : i64, scratch_operands = 0 : i64, tpu.core_type = #tpu.core_type<tc>, window_params = [{transform_indices = @transform_0, window_bounds = array<i64: 16, 32>}, {transform_indices = @transform_1, window_bounds = array<i64: 32, 128>}, {transform_indices = @transform_2, window_bounds = array<i64: 1, 128>}, {transform_indices = @transform_3, window_bounds = array<i64: 16, 128>}]} {
    %c0 = arith.constant 0 : index
    %c0_0 = arith.constant 0 : index
    %0 = vector.load %arg2[%c0, %c0_0] : memref<16x32xbf16, #tpu.memory_space<vmem>>, vector<16x32xbf16>
    %c0_1 = arith.constant 0 : index
    %c0_2 = arith.constant 0 : index
    %1 = vector.load %arg3[%c0_1, %c0_2] : memref<32x128xbf16, #tpu.memory_space<vmem>>, vector<32x128xbf16>
    %cst = arith.constant dense<0.000000e+00> : vector<16x128xf32>
    %2 = tpu.matmul %0, %1, %cst {dimension_numbers = #tpu.dot_dimension_numbers<[1], [0], [0], [1], [0, 0, 1, 1], [], []>} : vector<16x32xbf16>, vector<32x128xbf16>, vector<16x128xf32> -> vector<16x128xf32>
    %c0_3 = arith.constant 0 : index
    %c0_4 = arith.constant 0 : index
    %3 = vector.load %arg4[%c0_3, %c0_4] : memref<1x128xf32, #tpu.memory_space<vmem>>, vector<1x128xf32>
    %4 = vector.broadcast %3 : vector<1x128xf32> to vector<16x128xf32>
    %5 = arith.addf %2, %4 : vector<16x128xf32>
    %cst_5 = arith.constant 0.000000e+00 : f32
    %6 = vector.broadcast %cst_5 : f32 to vector<16x128xf32>
    %7 = arith.subf %6, %5 : vector<16x128xf32>
    %8 = math.exp %7 : vector<16x128xf32>
    %cst_6 = arith.constant 1.000000e+00 : f32
    %9 = vector.broadcast %cst_6 : f32 to vector<16x128xf32>
    %10 = arith.addf %9, %8 : vector<16x128xf32>
    %cst_7 = arith.constant 1.000000e+00 : f32
    %11 = vector.broadcast %cst_7 : f32 to vector<16x128xf32>
    %12 = arith.divf %11, %10 : vector<16x128xf32>
    %c0_8 = arith.constant 0 : index
    %c0_9 = arith.constant 0 : index
    %13 = vector.load %arg5[%c0_8, %c0_9] : memref<16x128xf32, #tpu.memory_space<vmem>>, vector<16x128xf32>
    tpu.vector_store %arg5[%c0_8, %c0_9], %12 {strides = array<i32>} : memref<16x128xf32, #tpu.memory_space<vmem>>, vector<16x128xf32>,
    return
  }
  func.func @transform_0(%arg0: i32, %arg1: i32) -> (i32, i32) {
    %c0_i32 = arith.constant 0 : i32
    %c0_i32_0 = arith.constant 0 : i32
    return %arg0, %c0_i32 : i32, i32
  }
  func.func @transform_1(%arg0: i32, %arg1: i32) -> (i32, i32) {
    %c0_i32 = arith.constant 0 : i32
    %c0_i32_0 = arith.constant 0 : i32
    return %c0_i32, %arg1 : i32, i32
  }
  func.func @transform_2(%arg0: i32, %arg1: i32) -> (i32, i32) {
    %c0_i32 = arith.constant 0 : i32
    %c0_i32_0 = arith.constant 0 : i32
    return %c0_i32, %arg1 : i32, i32
  }
  func.func @transform_3(%arg0: i32, %arg1: i32) -> (i32, i32) {
    %c0_i32 = arith.constant 0 : i32
    return %arg0, %arg1 : i32, i32
  }
}

</mosaic_0001>

<bundles_post_ra>
// kernel: custom_bert_forward.14
= control target key start
LH: loop header
LB: loop body
LE: loop exit
PB: predicated region body
PF: predicated region fallthrough
CT: control target
= control target key end

     0   :  { %vm64_vm0 = vcmask 1040384   ;;  %vm60_vm1 = vcmask 408576   ;;  %vm82_vm2 = vcmask 130048   ;;  %v186_v15 = vmov 16.0   ;;  %s251_s1 = inlined_call_operand.vmem [shape: bf16[50,16], index: 1, kind: input, shape index: {}]   ;;  %s252_s2 = inlined_call_operand.vmem [shape: f32[1,16], index: 2, kind: input, shape index: {}]   ;;  %s253_s0 = inlined_call_operand.vmem [shape: bf16[16,50], index: 0, kind: input, shape index: {}]   ;;  %s254_s3 = inlined_call_operand.vmem [shape: f32[1,16], index: 3, kind: input, shape index: {}]   ;;  %s255_s4 = inlined_call_operand.vmem [shape: f32[1,16], index: 4, kind: input, shape index: {}]   ;;  %s256_s5 = inlined_call_operand.vmem [shape: bf16[16,16], index: 5, kind: output, shape index: {}]  }
   0x1   :  { %v29_v0 = vld [vmem:[%s251_s1 + $0x18] sm:$0x1]  ;;  %v175_v4 = vld [vmem:[%s251_s1 + $0x10] sm:$0xff]  ;;  %v174_v5 = vld [vmem:[%s251_s1 + $0x8] sm:$0xff]  ;;  %180 = vrcp.f32 %v186_v15  ;;  %vm148_vm8 = vcmask 125952  }
   0x2   :  { %v52_v1 = vunpack.c.l.b16 %v29_v0  ;;  %v173_v6 = vld [vmem:[%s251_s1] sm:$0xff] }
   0x3   :  { %v172_v7 = vld [vmem:[%s253_s0] sm:$0xff] }
   0x4   :  { %v56_v2 = vpack.c.b16 %v52_v1, %v52_v1  ;;  %v177_v8 = vld [vmem:[%s252_s2] ss:$0 sm:$0xff] }
   0x5   :  { %v178_v46 = vld [vmem:[%s254_s3] ss:$0 sm:$0xff] }
   0x6   :  { %v66_v3 = vsel %vm64_vm0, %v56_v2, 0  ;;  %v179_v49 = vld [vmem:[%s255_s4] ss:$0 sm:$0xff] }
   0x7   :  { %72 = vmatpush.bf16.msra.mxu0 %v66_v3  ;;  %v181_v16 = vpop.eup %180 }
   0x8   :  { %v90_v17 = vmul.f32 16.0, %v181_v16  ;;  %vm94_vm3 = vweird.f32 %v181_v16 }
   0xa   :  { %v91_v18 = vsub.f32 1.0, %v90_v17 }
   0xb   :  { %73 = vmatpush.bf16.msra.mxu0 %v175_v4 }
   0xc   :  { %v92_v19 = vmul.f32 %v181_v16, %v91_v18 }
   0xe   :  { %v93_v20 = vadd.f32 %v181_v16, %v92_v19 }
   0xf   :  { %74 = vmatpush.bf16.msra.mxu0 %v174_v5 }
  0x10   :  { %v95_v21 = vsel %vm94_vm3, %v181_v16, %v93_v20 }
  0x13   :  { %75 = vmatpush.bf16.msra.mxu0 %v173_v6 }
  0x16   :  { %171 = vmatmul.msk.bf16.vlgmr.msra.gmra.mxu0 %vm60_vm1, %v172_v7 }
  0x93   :  { %v77_v9 = vpop.f32.mrf.mxu0 }
  0x94   :  { %v78_v10 = vadd.f32 %v177_v8, %v77_v9 }
  0x96   :  { %v83_v11 = vsel %vm82_vm2, %v78_v10, 0.0 }
  0x97   :  { %84 = vadd.xlane.f32.xlu0 %v83_v11 }
  0x9b   :  { %v79_v12 = vpop.f32.mrf.mxu0 }
  0x9c   :  { %v80_v13 = vadd.f32 %v177_v8, %v79_v12 }
  0x9e   :  { %v86_v14 = vsel %vm82_vm2, %v80_v13, 0.0 }
  0x9f   :  { %87 = vadd.xlane.f32.xlu0 %v86_v14 }
 0x10a   :  { %v85_v22 = vpop.xlane.xlu0 %84 }
 0x10b   :  { %v96_v23 = vmul.f32 %v95_v21, %v85_v22 }
 0x10d   :  { %v98_v24 = vsub.f32 %v78_v10, %v96_v23 }
 0x10f   :  { %v100_v25 = vmul.f32 %v98_v24, %v98_v24 }
 0x111   :  { %v102_v26 = vsel %vm82_vm2, %v100_v25, 0.0 }
 0x112   :  { %103 = vadd.xlane.f32.xlu1 %v102_v26  ;;  %v88_v27 = vpop.xlane.xlu0 %87 }
 0x113   :  { %v97_v28 = vmul.f32 %v95_v21, %v88_v27 }
 0x115   :  { %v99_v29 = vsub.f32 %v80_v13, %v97_v28 }
 0x117   :  { %v101_v30 = vmul.f32 %v99_v29, %v99_v29 }
 0x119   :  { %v105_v31 = vsel %vm82_vm2, %v101_v30, 0.0 }
 0x11a   :  { %106 = vadd.xlane.f32.xlu1 %v105_v31 }
 0x185   :  { %v104_v32 = vpop.xlane.xlu1 %103 }
 0x186   :  { %v108_v33 = vmul.f32 %v104_v32, %v95_v21 }
 0x188   :  { %v110_v34 = vadd.f32 1e-05, %v108_v33 }
 0x18a   :  { %182 = vrsqrt.f32 %v110_v34  ;;  %vm118_vm5 = vweird.f32 %v110_v34 }
 0x18d   :  { %v107_v35 = vpop.xlane.xlu1 %106 }
 0x18e   :  { %v109_v36 = vmul.f32 %v107_v35, %v95_v21 }
 0x190   :  { %v183_v37 = vpop.eup %182  ;;  %v111_v38 = vadd.f32 1e-05, %v109_v36 }
 0x191   :  { %v113_v39 = vmul.f32 %v183_v37, %v110_v34  ;;  %vm119_vm4 = vweird.f32 %v183_v37 }
 0x192   :  { %184 = vrsqrt.f32 %v111_v38  ;;  %vm120_vm6 = vmor %vm118_vm5, %vm119_vm4  ;;  %vm128_vm9 = vweird.f32 %v111_v38 }
 0x193   :  { %v114_v40 = vmul.f32 %v183_v37, %v113_v39 }
 0x195   :  { %v115_v41 = vmul.f32 0.5, %v114_v40 }
 0x197   :  { %v116_v42 = vsub.f32 1.5, %v115_v41 }
 0x198   :  { %v185_v43 = vpop.eup %184 }
 0x199   :  { %v117_v44 = vmul.f32 %v183_v37, %v116_v42  ;;  %v123_v45 = vmul.f32 %v185_v43, %v111_v38  ;;  %vm129_vm7 = vweird.f32 %v185_v43 }
 0x19a   :  { %vm130_vm10 = vmor %vm128_vm9, %vm129_vm7 }
 0x19b   :  { %v121_v47 = vsel %vm120_vm6, %v183_v37, %v117_v44  ;;  %v124_v48 = vmul.f32 %v185_v43, %v123_v45 }
 0x19c   :  { %v132_v50 = vmul.f32 %v121_v47, %v98_v24 }
 0x19d   :  { %v125_v51 = vmul.f32 0.5, %v124_v48 }
 0x19e   :  { %v138_v52 = vmul.f32 %v178_v46, %v132_v50 }
 0x19f   :  { %v126_v53 = vsub.f32 1.5, %v125_v51 }
 0x1a0   :  { %v144_v54 = vadd.f32 %v179_v49, %v138_v52 }
 0x1a1   :  { %v127_v55 = vmul.f32 %v185_v43, %v126_v53 }
 0x1a2   :  { %v146_v56 = vpack.c.bf16 %v144_v54, %v144_v54 }
 0x1a3   :  { %v131_v57 = vsel %vm130_vm10, %v185_v43, %v127_v55 }
 0x1a4   :  { %149 = vst.msk [vmem:[%s256_s5] sm:$0xf] %vm148_vm8, %v146_v56  ;;  %v133_v58 = vmul.f32 %v131_v57, %v99_v29 }
 0x1a6   :  { %v139_v59 = vmul.f32 %v178_v46, %v133_v58 }
 0x1a8   :  { %v145_v60 = vadd.f32 %v179_v49, %v139_v59 }
 0x1aa   :  { %v147_v61 = vpack.c.bf16 %v145_v60, %v145_v60 }
 0x1ac   :  { %150 = vst.msk [vmem:[%s256_s5 + $0x4] sm:$0xf] %vm148_vm8, %v147_v61 }

// kernel: custom_bert_forward.15
= control target key start
LH: loop header
LB: loop body
LE: loop exit
PB: predicated region body
PF: predicated region fallthrough
CT: control target
= control target key end

     0   :  { %vm37_vm0 = vcmask 1040384   ;;  %vm38_vm1 = vcmask 1041408   ;;  %v148_v1 = vmov 65535   ;;  %vm33_vm2 = vcmask 23552   ;;  %s205_s1 = inlined_call_operand.vmem [shape: bf16[3,16], index: 1, kind: input, shape index: {}]   ;;  %s206_s2 = inlined_call_operand.vmem [shape: f32[1,16], index: 2, kind: input, shape index: {}]   ;;  %s207_s0 = inlined_call_operand.vmem [shape: bf16[16,3], index: 0, kind: input, shape index: {}]   ;;  %s208_s3 = inlined_call_operand.vmem [shape: f32[1,16], index: 3, kind: input, shape index: {}]   ;;  %s209_s4 = inlined_call_operand.vmem [shape: f32[1,16], index: 4, kind: input, shape index: {}]   ;;  %s210_s5 = inlined_call_operand.vmem [shape: bf16[16,16], index: 5, kind: output, shape index: {}]  }
   0x1   :  { %v23_v0 = vld [vmem:[%s205_s1] sm:$0x3]  ;;  %v39_v2 = vsel %vm37_vm0, 4294967295, %v148_v1  ;;  %vm58_vm3 = vcmask 130048   ;;  %v149_v13 = vmov 16.0   ;;  %vm124_vm9 = vcmask 125952  }
   0x2   :  { %v40_v3 = vsel %vm38_vm1, %v39_v2, 0  ;;  %v136_v5 = vld [vmem:[%s207_s0] sm:$0xff]  ;;  %142 = vrcp.f32 %v149_v13 }
   0x3   :  { %v42_v4 = vand.u32 %v40_v3, %v23_v0  ;;  %v139_v6 = vld [vmem:[%s206_s2] ss:$0 sm:$0xff] }
   0x4   :  { %v140_v44 = vld [vmem:[%s208_s3] ss:$0 sm:$0xff] }
   0x5   :  { %51 = vmatpush.bf16.msra.mxu0 %v42_v4  ;;  %v141_v47 = vld [vmem:[%s209_s4] ss:$0 sm:$0xff] }
   0x8   :  { %135 = vmatmul.msk.bf16.vlgmr.msra.gmra.mxu0 %vm33_vm2, %v136_v5  ;;  %v143_v14 = vpop.eup %142 }
   0x9   :  { %v66_v15 = vmul.f32 16.0, %v143_v14  ;;  %vm70_vm4 = vweird.f32 %v143_v14 }
   0xb   :  { %v67_v16 = vsub.f32 1.0, %v66_v15 }
   0xd   :  { %v68_v17 = vmul.f32 %v143_v14, %v67_v16 }
   0xf   :  { %v69_v18 = vadd.f32 %v143_v14, %v68_v17 }
  0x11   :  { %v71_v19 = vsel %vm70_vm4, %v143_v14, %v69_v18 }
  0x85   :  { %v53_v7 = vpop.f32.mrf.mxu0 }
  0x86   :  { %v54_v8 = vadd.f32 %v139_v6, %v53_v7 }
  0x88   :  { %v59_v9 = vsel %vm58_vm3, %v54_v8, 0.0 }
  0x89   :  { %60 = vadd.xlane.f32.xlu0 %v59_v9 }
  0x8d   :  { %v55_v10 = vpop.f32.mrf.mxu0 }
  0x8e   :  { %v56_v11 = vadd.f32 %v139_v6, %v55_v10 }
  0x90   :  { %v62_v12 = vsel %vm58_vm3, %v56_v11, 0.0 }
  0x91   :  { %63 = vadd.xlane.f32.xlu0 %v62_v12 }
  0xfc   :  { %v61_v20 = vpop.xlane.xlu0 %60 }
  0xfd   :  { %v72_v21 = vmul.f32 %v71_v19, %v61_v20 }
  0xff   :  { %v74_v22 = vsub.f32 %v54_v8, %v72_v21 }
 0x101   :  { %v76_v23 = vmul.f32 %v74_v22, %v74_v22 }
 0x103   :  { %v78_v24 = vsel %vm58_vm3, %v76_v23, 0.0 }
 0x104   :  { %79 = vadd.xlane.f32.xlu1 %v78_v24  ;;  %v64_v25 = vpop.xlane.xlu0 %63 }
 0x105   :  { %v73_v26 = vmul.f32 %v71_v19, %v64_v25 }
 0x107   :  { %v75_v27 = vsub.f32 %v56_v11, %v73_v26 }
 0x109   :  { %v77_v28 = vmul.f32 %v75_v27, %v75_v27 }
 0x10b   :  { %v81_v29 = vsel %vm58_vm3, %v77_v28, 0.0 }
 0x10c   :  { %82 = vadd.xlane.f32.xlu1 %v81_v29 }
 0x177   :  { %v80_v30 = vpop.xlane.xlu1 %79 }
 0x178   :  { %v84_v31 = vmul.f32 %v80_v30, %v71_v19 }
 0x17a   :  { %v86_v32 = vadd.f32 1e-05, %v84_v31 }
 0x17c   :  { %144 = vrsqrt.f32 %v86_v32  ;;  %vm94_vm6 = vweird.f32 %v86_v32 }
 0x17f   :  { %v83_v33 = vpop.xlane.xlu1 %82 }
 0x180   :  { %v85_v34 = vmul.f32 %v83_v33, %v71_v19 }
 0x182   :  { %v145_v35 = vpop.eup %144  ;;  %v87_v36 = vadd.f32 1e-05, %v85_v34 }
 0x183   :  { %v89_v37 = vmul.f32 %v145_v35, %v86_v32  ;;  %vm95_vm5 = vweird.f32 %v145_v35 }
 0x184   :  { %146 = vrsqrt.f32 %v87_v36  ;;  %vm96_vm7 = vmor %vm94_vm6, %vm95_vm5  ;;  %vm104_vm10 = vweird.f32 %v87_v36 }
 0x185   :  { %v90_v38 = vmul.f32 %v145_v35, %v89_v37 }
 0x187   :  { %v91_v39 = vmul.f32 0.5, %v90_v38 }
 0x189   :  { %v92_v40 = vsub.f32 1.5, %v91_v39 }
 0x18a   :  { %v147_v41 = vpop.eup %146 }
 0x18b   :  { %v93_v42 = vmul.f32 %v145_v35, %v92_v40  ;;  %v99_v43 = vmul.f32 %v147_v41, %v87_v36  ;;  %vm105_vm8 = vweird.f32 %v147_v41 }
 0x18c   :  { %vm106_vm11 = vmor %vm104_vm10, %vm105_vm8 }
 0x18d   :  { %v97_v45 = vsel %vm96_vm7, %v145_v35, %v93_v42  ;;  %v100_v46 = vmul.f32 %v147_v41, %v99_v43 }
 0x18e   :  { %v108_v48 = vmul.f32 %v97_v45, %v74_v22 }
 0x18f   :  { %v101_v49 = vmul.f32 0.5, %v100_v46 }
 0x190   :  { %v114_v50 = vmul.f32 %v140_v44, %v108_v48 }
 0x191   :  { %v102_v51 = vsub.f32 1.5, %v101_v49 }
 0x192   :  { %v120_v52 = vadd.f32 %v141_v47, %v114_v50 }
 0x193   :  { %v103_v53 = vmul.f32 %v147_v41, %v102_v51 }
 0x194   :  { %v122_v54 = vpack.c.bf16 %v120_v52, %v120_v52 }
 0x195   :  { %v107_v55 = vsel %vm106_vm11, %v147_v41, %v103_v53 }
 0x196   :  { %125 = vst.msk [vmem:[%s210_s5] sm:$0xf] %vm124_vm9, %v122_v54  ;;  %v109_v56 = vmul.f32 %v107_v55, %v75_v27 }
 0x198   :  { %v115_v57 = vmul.f32 %v140_v44, %v109_v56 }
 0x19a   :  { %v121_v58 = vadd.f32 %v141_v47, %v115_v57 }
 0x19c   :  { %v123_v59 = vpack.c.bf16 %v121_v58, %v121_v58 }
 0x19e   :  { %126 = vst.msk [vmem:[%s210_s5 + $0x4] sm:$0xf] %vm124_vm9, %v123_v59 }

// kernel: custom_bert_forward.17
= control target key start
LH: loop header
LB: loop body
LE: loop exit
PB: predicated region body
PF: predicated region fallthrough
CT: control target
= control target key end

     0   :  { %vm42_vm0 = vcmask 261120   ;;  %vm62_vm1 = vcmask 781312   ;;  %s124_s1 = inlined_call_operand.vmem [shape: bf16[32,96], index: 1, kind: input, shape index: {}]   ;;  %s125_s2 = inlined_call_operand.vmem [shape: f32[1,96], index: 2, kind: input, shape index: {}]   ;;  %s126_s0 = inlined_call_operand.vmem [shape: bf16[16,32], index: 0, kind: input, shape index: {}]   ;;  %s127_s3 = inlined_call_operand.vmem [shape: bf16[16,96], index: 3, kind: output, shape index: {}]  }
   0x1   :  { %v84_v0 = vld [vmem:[%s124_s1 + $0x8] sm:$0xff]  ;;  %v83_v1 = vld [vmem:[%s124_s1] sm:$0xff] }
   0x2   :  { %52 = vmatpush.bf16.msra.mxu0 %v84_v0  ;;  %v82_v2 = vld [vmem:[%s126_s0] sm:$0xff] }
   0x3   :  { %v85_v3 = vld [vmem:[%s125_s2] ss:$0 sm:$0xff] }
   0x6   :  { %53 = vmatpush.bf16.msra.mxu0 %v83_v1 }
   0x9   :  { %81 = vmatmul.msk.bf16.vlgmr.msra.gmra.mxu0 %vm42_vm0, %v82_v2 }
  0x86   :  { %v55_v4 = vpop.f32.mrf.mxu0 }
  0x87   :  { %v56_v5 = vadd.f32 %v85_v3, %v55_v4 }
  0x89   :  { %v60_v6 = vpack.c.bf16 %v56_v5, %v56_v5 }
  0x8b   :  { %63 = vst.msk [vmem:[%s127_s3] sm:$0xf] %vm62_vm1, %v60_v6 }
  0x8e   :  { %v57_v7 = vpop.f32.mrf.mxu0 }
  0x8f   :  { %v58_v8 = vadd.f32 %v85_v3, %v57_v7 }
  0x91   :  { %v61_v9 = vpack.c.bf16 %v58_v8, %v58_v8 }
  0x93   :  { %64 = vst.msk [vmem:[%s127_s3 + $0x4] sm:$0xf] %vm62_vm1, %v61_v9 }

// kernel: custom_bert_forward.16
= control target key start
LH: loop header
LB: loop body
LE: loop exit
PB: predicated region body
PF: predicated region fallthrough
CT: control target
= control target key end

     0   :  { %s469_s15 = smov 0   ;;  %s471_s16 = smov 0   ;;  %s520_s0 = inlined_call_operand.vmem [shape: bf16[2,8,32], index: 0, kind: input, shape index: {}]   ;;  %s521_s1 = inlined_call_operand.vmem [shape: f32[8,32], index: 1, kind: input, shape index: {}]   ;;  %s522_s2 = inlined_call_operand.vmem [shape: f32[1,32], index: 2, kind: input, shape index: {}]   ;;  %s523_s3 = inlined_call_operand.vmem [shape: f32[1,32], index: 3, kind: input, shape index: {}]   ;;  %s524_s4 = inlined_call_operand.vmem [shape: bf16[2,8,32], index: 4, kind: output, shape index: {}]  }
   0x1   :  { %s473_s17 = smov 0  }
   0x2 LB: > { %s26_s18 = sadd.s32 1, %s437_s16  ;;  %p383_p0 = scmp.ge.s32.totalorder %s441_s17, 1  ;;  %s441_s17 = sphi %s473_s17, %s14_s17   ;;  %s437_s16 = sphi %s471_s16, %s526_s16   ;;  %s433_s15 = sphi %s469_s15, %s525_s15  }
   0x3   : > { %p28_p1 = scmp.ge.s32.totalorder %s26_s18, 2  ;;  %p189_p2 = scmp.lt.s32.totalorder %s441_s17, 3 }
   0x5   : > { %s528_s18 = smov (%p28_p1, %s26_s18), 0  ;;  %p190_p3 = pnand %p383_p0, %p189_p2 }
   0x6   : > { %p223_p4 = scmp.lt.s32.totalorder (!%p190_p3), %s433_s15, 1 }
   0x7   : > { %193 = sbr.rel (%p190_p3) target bundleno = 291 (0x123), region = 36 }
   0xc   : > { %s530_s15 = smov (!%p223_p4, %s433_s15), 1  ;;  %v243_v1 = vld [vmem:[%s521_s1] sm:$0xff]  ;;  %vm245_vm0 = vcmask 261120   ;;  %v443_v5 = vmov 32.0   ;;  %vm286_vm5 = vcmask 257024  }
   0xd   : > { %s384_s19 = sshll.u32 %s530_s15, 2  ;;  %415 = vrcp.f32 %v443_v5  ;;  %v413_v26 = vld [vmem:[%s522_s2] ss:$0 sm:$0xff] }
   0xe   : > { %s229_s22 = scalar_lea.vmem %s520_s0, %s384_s19  ;;  %v414_v28 = vld [vmem:[%s523_s3] ss:$0 sm:$0xff]  ;;  %s240_s5 = scalar_lea.vmem %s524_s4, %s384_s19 }
   0xf   : > { %v241_v0 = vld [vmem:[%s229_s22] sm:$0xf] }
  0x10   : > { %v242_v2 = vunpack.c.l.bf16 %v241_v0 }
  0x12   : > { %v244_v3 = vadd.f32 %v243_v1, %v242_v2 }
  0x13   : > { %v416_v6 = vpop.eup %415 }
  0x14   : > { %v246_v4 = vsel %vm245_vm0, %v244_v3, 0.0  ;;  %v250_v7 = vmul.f32 32.0, %v416_v6  ;;  %vm254_vm1 = vweird.f32 %v416_v6 }
  0x15   : > { %247 = vadd.xlane.f32.xlu0 %v246_v4 }
  0x16   : > { %v251_v8 = vsub.f32 1.0, %v250_v7 }
  0x18   : > { %v252_v9 = vmul.f32 %v416_v6, %v251_v8 }
  0x1a   : > { %v253_v10 = vadd.f32 %v416_v6, %v252_v9 }
  0x1c   : > { %v255_v11 = vsel %vm254_vm1, %v416_v6, %v253_v10 }
  0x88   : > { %v248_v12 = vpop.xlane.xlu0 %247 }
  0x89   : > { %v256_v13 = vmul.f32 %v255_v11, %v248_v12 }
  0x8b   : > { %v257_v14 = vsub.f32 %v244_v3, %v256_v13 }
  0x8d   : > { %v258_v15 = vmul.f32 %v257_v14, %v257_v14 }
  0x8f   : > { %v259_v16 = vsel %vm245_vm0, %v258_v15, 0.0 }
  0x90   : > { %260 = vadd.xlane.f32.xlu0 %v259_v16 }
 0x103   : > { %v261_v17 = vpop.xlane.xlu0 %260 }
 0x104   : > { %v262_v18 = vmul.f32 %v261_v17, %v255_v11 }
 0x106   : > { %v263_v19 = vadd.f32 1e-12, %v262_v18 }
 0x108   : > { %417 = vrsqrt.f32 %v263_v19  ;;  %vm270_vm3 = vweird.f32 %v263_v19 }
 0x10e   : > { %v418_v20 = vpop.eup %417 }
 0x10f   : > { %v265_v21 = vmul.f32 %v418_v20, %v263_v19  ;;  %vm271_vm2 = vweird.f32 %v418_v20 }
 0x110   : > { %vm272_vm4 = vmor %vm270_vm3, %vm271_vm2 }
 0x111   : > { %v266_v22 = vmul.f32 %v418_v20, %v265_v21 }
 0x113   : > { %v267_v23 = vmul.f32 0.5, %v266_v22 }
 0x115   : > { %v268_v24 = vsub.f32 1.5, %v267_v23 }
 0x117   : > { %v269_v25 = vmul.f32 %v418_v20, %v268_v24 }
 0x119   : > { %v273_v27 = vsel %vm272_vm4, %v418_v20, %v269_v25 }
 0x11a   : > { %v274_v29 = vmul.f32 %v273_v27, %v257_v14 }
 0x11c   : > { %v279_v30 = vmul.f32 %v413_v26, %v274_v29 }
 0x11e   : > { %v284_v31 = vadd.f32 %v414_v28, %v279_v30 }
 0x120   : > { %v285_v32 = vpack.c.bf16 %v284_v31, %v284_v31 }
 0x122   : > { %287 = vst.msk [vmem:[%s240_s5] sm:$0xf] %vm286_vm5, %v285_v32 }
 0x123 PF: > { %s14_s17 = sadd.s32 1, %s441_s17   ;;  %s525_s15 = smov %s437_s16 }
 0x124   : > { %p11_p5 = scmp.ge.s32.totalorder %s14_s17, 4   ;;  %s526_s16 = smov %s528_s18 }
 0x126   :  { %13 = sbr.rel (!%p11_p5) target bundleno = 2 (0x2), region = 69 }

// kernel: custom_bert_forward.20
= control target key start
LH: loop header
LB: loop body
LE: loop exit
PB: predicated region body
PF: predicated region fallthrough
CT: control target
= control target key end

     0   :  { %vm42_vm0 = vcmask 261120   ;;  %s147_s1 = inlined_call_operand.vmem [shape: bf16[32,128], index: 1, kind: input, shape index: {}]   ;;  %s148_s2 = inlined_call_operand.vmem [shape: f32[1,128], index: 2, kind: input, shape index: {}]   ;;  %s149_s0 = inlined_call_operand.vmem [shape: bf16[16,32], index: 0, kind: input, shape index: {}]   ;;  %s150_s3 = inlined_call_operand.vmem [shape: bf16[16,128], index: 3, kind: output, shape index: {}]  }
   0x1   :  { %v101_v0 = vld [vmem:[%s147_s1 + $0x8] sm:$0xff]  ;;  %v100_v1 = vld [vmem:[%s147_s1] sm:$0xff] }
   0x2   :  { %52 = vmatpush.bf16.msra.mxu0 %v101_v0  ;;  %v99_v2 = vld [vmem:[%s149_s0] sm:$0xff] }
   0x3   :  { %v107_v3 = vld [vmem:[%s148_s2] ss:$0 sm:$0xff] }
   0x6   :  { %53 = vmatpush.bf16.msra.mxu0 %v100_v1 }
   0x9   :  { %98 = vmatmul.msk.bf16.vlgmr.msra.gmra.mxu0 %vm42_vm0, %v99_v2 }
  0x86   :  { %v55_v4 = vpop.f32.mrf.mxu0 }
  0x87   :  { %v56_v5 = vadd.f32 %v107_v3, %v55_v4 }
  0x89   :  { %v62_v6 = vmul.f32 0.044715, %v56_v5  ;;  %v60_v21 = vmul.f32 0.5, %v56_v5 }
  0x8b   :  { %v64_v7 = vmul.f32 %v62_v6, %v56_v5 }
  0x8d   :  { %v66_v8 = vmul.f32 %v64_v7, %v56_v5 }
  0x8e   :  { %v57_v9 = vpop.f32.mrf.mxu0 }
  0x8f   :  { %v68_v10 = vadd.f32 %v66_v8, %v56_v5  ;;  %v58_v11 = vadd.f32 %v107_v3, %v57_v9 }
  0x91   :  { %v63_v12 = vmul.f32 0.044715, %v58_v11  ;;  %v70_v13 = vmul.f32 0.7978846, %v68_v10  ;;  %v61_v22 = vmul.f32 0.5, %v58_v11 }
  0x93   :  { %v65_v14 = vmul.f32 %v63_v12, %v58_v11  ;;  %108 = vtanh.f32 %v70_v13 }
  0x95   :  { %v67_v15 = vmul.f32 %v65_v14, %v58_v11 }
  0x97   :  { %v69_v16 = vadd.f32 %v67_v15, %v58_v11 }
  0x99   :  { %v71_v17 = vmul.f32 0.7978846, %v69_v16  ;;  %v109_v18 = vpop.eup %108 }
  0x9a   :  { %v74_v19 = vadd.f32 1.0, %v109_v18 }
  0x9b   :  { %110 = vtanh.f32 %v71_v17 }
  0x9c   :  { %v76_v24 = vmul.f32 %v74_v19, %v60_v21 }
  0xa1   :  { %v111_v20 = vpop.eup %110 }
  0xa2   :  { %v75_v23 = vadd.f32 1.0, %v111_v20 }
  0xa4   :  { %v77_v25 = vmul.f32 %v75_v23, %v61_v22 }
  0xa6   :  { %v105_v26 = vpack.c.bf16 %v77_v25, %v76_v24 }
  0xa8   :  { %106 = vst [vmem:[%s150_s3] sm:$0xff] %v105_v26  }

// kernel: custom_bert_forward.19
= control target key start
LH: loop header
LB: loop body
LE: loop exit
PB: predicated region body
PF: predicated region fallthrough
CT: control target
= control target key end

     0   :  { %vm51_vm0 = vcmask 261120   ;;  %v177_v15 = vmov 32.0   ;;  %vm140_vm6 = vcmask 257024   ;;  %s245_s1 = inlined_call_operand.vmem [shape: bf16[32,32], index: 1, kind: input, shape index: {}]   ;;  %s246_s2 = inlined_call_operand.vmem [shape: f32[1,32], index: 2, kind: input, shape index: {}]   ;;  %s247_s0 = inlined_call_operand.vmem [shape: bf16[16,32], index: 0, kind: input, shape index: {}]   ;;  %s248_s3 = inlined_call_operand.vmem [shape: bf16[16,32], index: 3, kind: input, shape index: {}]   ;;  %s249_s4 = inlined_call_operand.vmem [shape: f32[1,32], index: 4, kind: input, shape index: {}]   ;;  %s250_s5 = inlined_call_operand.vmem [shape: f32[1,32], index: 5, kind: input, shape index: {}]   ;;  %s251_s6 = inlined_call_operand.vmem [shape: bf16[16,32], index: 6, kind: output, shape index: {}]  }
   0x1   :  { %v162_v0 = vld [vmem:[%s245_s1 + $0x8] sm:$0xff]  ;;  %v161_v1 = vld [vmem:[%s245_s1] sm:$0xff]  ;;  %171 = vrcp.f32 %v177_v15 }
   0x2   :  { %61 = vmatpush.bf16.msra.mxu0 %v162_v0  ;;  %v160_v2 = vld [vmem:[%s247_s0] sm:$0xff] }
   0x3   :  { %v164_v3 = vld [vmem:[%s248_s3] sm:$0xff]  }
   0x4   :  { %v168_v4 = vld [vmem:[%s246_s2] ss:$0 sm:$0xff]  ;;  %v165_v5 = vunpack.c.l.bf16 %v164_v3  ;;  %v166_v10 = vunpack.c.h.bf16 %v164_v3 }
   0x5   :  { %v169_v46 = vld [vmem:[%s249_s4] ss:$0 sm:$0xff] }
   0x6   :  { %62 = vmatpush.bf16.msra.mxu0 %v161_v1  ;;  %v170_v49 = vld [vmem:[%s250_s5] ss:$0 sm:$0xff] }
   0x7   :  { %v172_v16 = vpop.eup %171 }
   0x8   :  { %v82_v17 = vmul.f32 32.0, %v172_v16  ;;  %vm86_vm1 = vweird.f32 %v172_v16 }
   0x9   :  { %159 = vmatmul.msk.bf16.vlgmr.msra.gmra.mxu0 %vm51_vm0, %v160_v2 }
   0xa   :  { %v83_v18 = vsub.f32 1.0, %v82_v17 }
   0xc   :  { %v84_v19 = vmul.f32 %v172_v16, %v83_v18 }
   0xe   :  { %v85_v20 = vadd.f32 %v172_v16, %v84_v19 }
  0x10   :  { %v87_v21 = vsel %vm86_vm1, %v172_v16, %v85_v20 }
  0x86   :  { %v64_v6 = vpop.f32.mrf.mxu0 }
  0x87   :  { %v65_v7 = vadd.f32 %v168_v4, %v64_v6 }
  0x89   :  { %v73_v8 = vadd.f32 %v165_v5, %v65_v7 }
  0x8b   :  { %v75_v9 = vsel %vm51_vm0, %v73_v8, 0.0 }
  0x8c   :  { %76 = vadd.xlane.f32.xlu0 %v75_v9 }
  0x8e   :  { %v66_v11 = vpop.f32.mrf.mxu0 }
  0x8f   :  { %v67_v12 = vadd.f32 %v168_v4, %v66_v11 }
  0x91   :  { %v74_v13 = vadd.f32 %v166_v10, %v67_v12 }
  0x93   :  { %v78_v14 = vsel %vm51_vm0, %v74_v13, 0.0 }
  0x94   :  { %79 = vadd.xlane.f32.xlu0 %v78_v14 }
  0xff   :  { %v77_v22 = vpop.xlane.xlu0 %76 }
 0x100   :  { %v88_v23 = vmul.f32 %v87_v21, %v77_v22 }
 0x102   :  { %v90_v24 = vsub.f32 %v73_v8, %v88_v23 }
 0x104   :  { %v92_v25 = vmul.f32 %v90_v24, %v90_v24 }
 0x106   :  { %v94_v26 = vsel %vm51_vm0, %v92_v25, 0.0 }
 0x107   :  { %95 = vadd.xlane.f32.xlu1 %v94_v26  ;;  %v80_v27 = vpop.xlane.xlu0 %79 }
 0x108   :  { %v89_v28 = vmul.f32 %v87_v21, %v80_v27 }
 0x10a   :  { %v91_v29 = vsub.f32 %v74_v13, %v89_v28 }
 0x10c   :  { %v93_v30 = vmul.f32 %v91_v29, %v91_v29 }
 0x10e   :  { %v97_v31 = vsel %vm51_vm0, %v93_v30, 0.0 }
 0x10f   :  { %98 = vadd.xlane.f32.xlu1 %v97_v31 }
 0x17a   :  { %v96_v32 = vpop.xlane.xlu1 %95 }
 0x17b   :  { %v100_v33 = vmul.f32 %v96_v32, %v87_v21 }
 0x17d   :  { %v102_v34 = vadd.f32 1e-12, %v100_v33 }
 0x17f   :  { %173 = vrsqrt.f32 %v102_v34  ;;  %vm110_vm3 = vweird.f32 %v102_v34 }
 0x182   :  { %v99_v35 = vpop.xlane.xlu1 %98 }
 0x183   :  { %v101_v36 = vmul.f32 %v99_v35, %v87_v21 }
 0x185   :  { %v174_v37 = vpop.eup %173  ;;  %v103_v38 = vadd.f32 1e-12, %v101_v36 }
 0x186   :  { %v105_v39 = vmul.f32 %v174_v37, %v102_v34  ;;  %vm111_vm2 = vweird.f32 %v174_v37 }
 0x187   :  { %175 = vrsqrt.f32 %v103_v38  ;;  %vm112_vm4 = vmor %vm110_vm3, %vm111_vm2  ;;  %vm120_vm7 = vweird.f32 %v103_v38 }
 0x188   :  { %v106_v40 = vmul.f32 %v174_v37, %v105_v39 }
 0x18a   :  { %v107_v41 = vmul.f32 0.5, %v106_v40 }
 0x18c   :  { %v108_v42 = vsub.f32 1.5, %v107_v41 }
 0x18d   :  { %v176_v43 = vpop.eup %175 }
 0x18e   :  { %v109_v44 = vmul.f32 %v174_v37, %v108_v42  ;;  %v115_v45 = vmul.f32 %v176_v43, %v103_v38  ;;  %vm121_vm5 = vweird.f32 %v176_v43 }
 0x18f   :  { %vm122_vm8 = vmor %vm120_vm7, %vm121_vm5 }
 0x190   :  { %v113_v47 = vsel %vm112_vm4, %v174_v37, %v109_v44  ;;  %v116_v48 = vmul.f32 %v176_v43, %v115_v45 }
 0x191   :  { %v124_v50 = vmul.f32 %v113_v47, %v90_v24 }
 0x192   :  { %v117_v51 = vmul.f32 0.5, %v116_v48 }
 0x193   :  { %v130_v52 = vmul.f32 %v169_v46, %v124_v50 }
 0x194   :  { %v118_v53 = vsub.f32 1.5, %v117_v51 }
 0x195   :  { %v136_v54 = vadd.f32 %v170_v49, %v130_v52 }
 0x196   :  { %v119_v55 = vmul.f32 %v176_v43, %v118_v53 }
 0x197   :  { %v138_v56 = vpack.c.bf16 %v136_v54, %v136_v54 }
 0x198   :  { %v123_v57 = vsel %vm122_vm8, %v176_v43, %v119_v55 }
 0x199   :  { %141 = vst.msk [vmem:[%s251_s6] sm:$0xf] %vm140_vm6, %v138_v56  ;;  %v125_v58 = vmul.f32 %v123_v57, %v91_v29 }
 0x19b   :  { %v131_v59 = vmul.f32 %v169_v46, %v125_v58 }
 0x19d   :  { %v137_v60 = vadd.f32 %v170_v49, %v131_v59 }
 0x19f   :  { %v139_v61 = vpack.c.bf16 %v137_v60, %v137_v60 }
 0x1a1   :  { %142 = vst.msk [vmem:[%s251_s6 + $0x4] sm:$0xf] %vm140_vm6, %v139_v61 }

// kernel: custom_bert_forward.18
= control target key start
LH: loop header
LB: loop body
LE: loop exit
PB: predicated region body
PF: predicated region fallthrough
CT: control target
= control target key end

     0   :  { %s577_s9 = smov 0   ;;  %s650_s0 = inlined_call_operand.vmem [shape: bf16[16,96], index: 0, kind: input, shape index: {}]   ;;  %s651_s1 = inlined_call_operand.vmem [shape: f32[2,1,8], index: 1, kind: input, shape index: {}]   ;;  %s652_s2 = inlined_call_operand.vmem [shape: bf16[16,32], index: 2, kind: output, shape index: {}]  }
   0x1 LB: > { %s484_s10 = sadd.s32 4294967295, %s546_s9   ;;  %p488_p0 = scmp.ge.s32.totalorder %s546_s9, 1  ;;  %s546_s9 = sphi %s577_s9, %s12_s9  }
   0x2   : > { %p119_p1 = scmp.lt.s32.totalorder %s546_s9, 3 }
   0x4   : > { %p120_p2 = pnand %p488_p0, %p119_p1 }
   0x5   : > { %p142_p3 = scmp.lt.s32.totalorder (!%p120_p2), %s484_s10, 1  ;;  %s548_s18 = smov (!%p120_p2), 96  }
   0x6   : > { %123 = sbr.rel (%p120_p2) target bundleno = 1196 (0x4ac), region = 28  ;;  %s549_s19 = smov (!%p120_p2), 88  }
   0x7   : > { %s550_s20 = smov (!%p120_p2), 120   ;;  %s551_s21 = smov (!%p120_p2), 64  }
   0x8   : > { %s552_s22 = smov (!%p120_p2), 80   ;;  %s553_s23 = smov (!%p120_p2), 72  }
   0x9   : > { %s554_s26 = smov (!%p120_p2), 112   ;;  %s555_s27 = smov (!%p120_p2), 104  }
   0xa   : > { %s556_s28 = smov (!%p120_p2), 56   ;;  %s557_s29 = smov (!%p120_p2), 40  }
   0xb   : > { %s654_s10 = smov (!%p142_p3, %s484_s10), 1  ;;  %vm164_vm0 = vcmask 64512   ;;  %vm201_vm1 = vcmask 1043456   ;;  %vm219_vm2 = vcmask 60416   ;;  %s558_s5 = smov 48   ;;  %vm286_vm3 = vcmask 126016  }
   0xc   : > { %s489_s11 = sshll.u32 %s654_s10, 2  ;;  %s148_s17 = scalar_lea.vmem %s651_s1, %s654_s10  ;;  %vm353_vm4 = vcmask 191616   ;;  %vm420_vm5 = vcmask 257216  }
   0xd   : > { %s145_s14 = scalar_lea.vmem %s650_s0, %s489_s11  ;;  %v523_v17 = vld [vmem:[%s148_s17] ss:$0 sm:$0xff]  ;;  %s630_s4 = scalar_lea.vmem %s652_s2, %s489_s11 }
   0xe   : > { %v155_v0 = vld [vmem:[%s145_s14] sm:$0xf]  ;;  %s559_s6 = smov 8   ;;  %s560_s7 = smov 16  }
   0xf   : > { %v160_v1 = vunpack.c.l.b16 %v155_v0  ;;  %v221_v3 = vld [vmem:[%s145_s14] sm:$0xf]  ;;  %s561_s8 = smov 24  }
  0x10   : > { %v223_v4 = vunpack.c.l.b16 %v221_v3  ;;  %v288_v8 = vld [vmem:[%s145_s14] sm:$0xf] }
  0x11   : > { %v161_v2 = vpack.c.b16 %v160_v1, %v160_v1  ;;  %v290_v10 = vunpack.c.l.b16 %v288_v8  ;;  %v355_v12 = vld [vmem:[%s145_s14] sm:$0xf] }
  0x12   : > { %v597_v5 = vpack.c.b16 %v223_v4, %v223_v4  ;;  %v357_v14 = vunpack.c.l.b16 %v355_v12 }
  0x13   : > { %162 = vrot.lane.b32.xlu0 %v161_v2, %s548_s18  ;;  %v604_v13 = vpack.c.b16 %v290_v10, %v290_v10 }
  0x14   : > { %227 = vrot.lane.b32.xlu1 %v597_v5, %s549_s19  ;;  %225 = vrot.lane.b32.xlu2 %v597_v5, %s550_s20  ;;  %v358_v16 = vpack.c.b16 %v357_v14, %v357_v14 }
  0x1c   : > { %196 = vrot.lane.b32.xlu2 %v161_v2, %s551_s21 }
  0x24   : > { %294 = vrot.lane.b32.xlu2 %v604_v13, %s552_s22 }
  0x2c   : > { %361 = vrot.lane.b32.xlu2 %v358_v16, %s553_s23 }
  0x34   : > { %292 = vrot.lane.b32.xlu2 %v604_v13, %s554_s26 }
  0x3c   : > { %359 = vrot.lane.b32.xlu2 %v358_v16, %s555_s27 }
  0x6e   : > { %v226_v15 = vpop.permute.xlu2 %225 }
  0x76   : > { %v197_v22 = vpop.permute.xlu2 %196 }
  0x77   : > { %v203_v27 = vsel %vm201_vm1, %v197_v22, 0 }
  0x78   : > { %212 = vmatpush.bf16.msra.mxu1 %v203_v27 }
  0x7e   : > { %v295_v23 = vpop.permute.xlu2 %294 }
  0x7f   : > { %v300_v25 = vsel %vm164_vm0, %v295_v23, 0 }
  0x80   : > { %309 = vmatpush.bf16.xpose.msrb.mxu1 %v300_v25 }
  0x85   : > { %v163_v6 = vpop.permute.xlu0 %162 }
  0x86   : > { %v169_v7 = vsel %vm164_vm0, %v163_v6, 0  ;;  %v228_v9 = vpop.permute.xlu1 %227  ;;  %v362_v24 = vpop.permute.xlu2 %361 }
  0x87   : > { %178 = vmatpush.bf16.xpose.msra.mxu0 %v169_v7  ;;  %v233_v11 = vsel %vm164_vm0, %v228_v9, 0  ;;  %v367_v26 = vsel %vm164_vm0, %v362_v24, 0 }
  0x88   : > { %242 = vmatpush.bf16.xpose.msra.mxu2 %v233_v11 }
  0x8e   : > { %491 = vmatmul.msk.bf16.vlgmr.msra.gmra.mxu0 %vm164_vm0, %v155_v0  ;;  %v293_v28 = vpop.permute.xlu2 %292 }
  0x8f   : > { %493 = vmatmul.msk.bf16.vlgmr.msra.gmra.mxu2 %vm164_vm0, %v226_v15  ;;  %376 = vmatpush.bf16.xpose.msrb.mxu0 %v367_v26 }
  0x96   : > { %v360_v29 = vpop.permute.xlu2 %359 }
  0x9e   : > { %497 = vmatmul.msk.bf16.vlgmr.msrb.gmra.mxu0 %vm164_vm0, %v360_v29 }
 0x10b   : > { %v180_v18 = vpop.f32.mrf.mxu0 }
 0x10c   : > { %v181_v19 = vadd.f32 %v523_v17, %v180_v18 }
 0x10e   : > { %v184_v20 = vsel %vm164_vm0, %v181_v19, -inf }
 0x10f   : > { %185 = vmax.xlane.f32.xlu0 %v184_v20 }
 0x112   : > { %v244_v30 = vpop.f32.mrf.mxu2 }
 0x113   : > { %v182_v21 = vpop.f32.mrf.mxu0  ;;  %v245_v31 = vadd.f32 %v523_v17, %v244_v30 }
 0x115   : > { %v248_v33 = vsel %vm164_vm0, %v245_v31, -inf }
 0x116   : > { %249 = vmax.xlane.f32.xlu2 %v248_v33 }
 0x11a   : > { %v246_v36 = vpop.f32.mrf.mxu2 }
 0x11b   : > { %v378_v39 = vpop.f32.mrf.mxu0 }
 0x11c   : > { %v379_v40 = vadd.f32 %v523_v17, %v378_v39 }
 0x11e   : > { %v382_v41 = vsel %vm164_vm0, %v379_v40, -inf }
 0x123   : > { %v380_v43 = vpop.f32.mrf.mxu0 }
 0x182   : > { %v186_v32 = vpop.xlane.xlu0 %185 }
 0x183   : > { %v187_v34 = vsub.f32 %v181_v19, %v186_v32 }
 0x185   : > { %v188_v35 = vmul.f32 1.442695, %v187_v34 }
 0x187   : > { %524 = vpow2.f32 %v188_v35 }
 0x189   : > { %v250_v49 = vpop.xlane.xlu2 %249 }
 0x18a   : > { %v251_v51 = vsub.f32 %v245_v31, %v250_v49 }
 0x18c   : > { %v252_v52 = vmul.f32 1.442695, %v251_v51 }
 0x18d   : > { %v525_v37 = vpop.eup %524 }
 0x18e   : > { %v190_v38 = vsel %vm164_vm0, %v525_v37, 0.0 }
 0x18f   : > { %191 = vadd.xlane.f32.xlu1 %v190_v38 }
 0x197   : > { %383 = vmax.xlane.f32.xlu1 %v382_v41 }
 0x1b0   : > { %260 = vrot.lane.b32.xlu1 %v597_v5, %s556_s28 }
 0x1b8   : > { %394 = vrot.lane.b32.xlu1 %v358_v16, %s557_s29 }
 0x202   : > { %v192_v42 = vpop.xlane.xlu1 %191 }
 0x203   : > { %526 = vrcp.f32 %v192_v42 }
 0x204   : > { %528 = vpow2.f32 %v252_v52 }
 0x209   : > { %v527_v44 = vpop.eup %526 }
 0x20a   : > { %v194_v45 = vmul.f32 %v527_v44, %v525_v37  ;;  %v384_v53 = vpop.xlane.xlu1 %383  ;;  %v529_v59 = vpop.eup %528 }
 0x20b   : > { %v385_v56 = vsub.f32 %v379_v40, %v384_v53  ;;  %v254_v61 = vsel %vm164_vm0, %v529_v59, 0.0 }
 0x20c   : > { %v195_v46 = vpack.c.bf16 %v194_v45, %v194_v45 }
 0x20d   : > { %v386_v58 = vmul.f32 1.442695, %v385_v56 }
 0x20e   : > { %492 = vmatmul.msk.bf16.vlgmr.msra.gmra.mxu1 %vm164_vm0, %v195_v46 }
 0x20f   : > { %530 = vpow2.f32 %v386_v58 }
 0x215   : > { %v531_v62 = vpop.eup %530 }
 0x216   : > { %v388_v63 = vsel %vm164_vm0, %v531_v62, 0.0 }
 0x21e   : > { %495 = vmatmul.msk.bf16.vlgmr.msrb.gmra.mxu1 %vm164_vm0, %v293_v28 }
 0x222   : > { %v261_v0 = vpop.permute.xlu1 %260 }
 0x223   : > { %v266_v1 = vsel %vm201_vm1, %v261_v0, 0 }
 0x224   : > { %275 = vmatpush.bf16.msra.mxu3 %v266_v1 }
 0x22a   : > { %v395_v2 = vpop.permute.xlu1 %394 }
 0x22b   : > { %v400_v3 = vsel %vm201_vm1, %v395_v2, 0 }
 0x22c   : > { %409 = vmatpush.bf16.msrb.mxu2 %v400_v3 }
 0x28b   : > { %v214_v47 = vpop.f32.mrf.mxu1 }
 0x28c   : > { %v218_v48 = vpack.c.bf16 %v214_v47, %v214_v47 }
 0x28e   : > { %220 = vst.msk [vmem:[%s630_s4] sm:$0xf] %vm219_vm2, %v218_v48 }
 0x293   : > { %v216_v50 = vpop.f32.mrf.mxu1 }
 0x29b   : > { %v311_v54 = vpop.f32.mrf.mxu1 }
 0x29c   : > { %v312_v55 = vadd.f32 %v523_v17, %v311_v54 }
 0x29e   : > { %v315_v57 = vsel %vm164_vm0, %v312_v55, -inf }
 0x29f   : > { %316 = vmax.xlane.f32.xlu0 %v315_v57 }
 0x2a3   : > { %v313_v60 = vpop.f32.mrf.mxu1 }
 0x2a7   : > { %255 = vadd.xlane.f32.xlu0 %v254_v61 }
 0x2af   : > { %389 = vadd.xlane.f32.xlu0 %v388_v63 }
 0x312   : > { %v317_v4 = vpop.xlane.xlu0 %316 }
 0x313   : > { %v318_v5 = vsub.f32 %v312_v55, %v317_v4 }
 0x315   : > { %v319_v6 = vmul.f32 1.442695, %v318_v5 }
 0x317   : > { %532 = vpow2.f32 %v319_v6 }
 0x31a   : > { %v256_v7 = vpop.xlane.xlu0 %255 }
 0x31b   : > { %534 = vrcp.f32 %v256_v7 }
 0x31d   : > { %v533_v8 = vpop.eup %532 }
 0x31e   : > { %v321_v9 = vsel %vm164_vm0, %v533_v8, 0.0 }
 0x31f   : > { %322 = vadd.xlane.f32.xlu0 %v321_v9 }
 0x321   : > { %v535_v10 = vpop.eup %534 }
 0x322   : > { %v390_v11 = vpop.xlane.xlu0 %389  ;;  %v258_v12 = vmul.f32 %v535_v10, %v529_v59 }
 0x323   : > { %536 = vrcp.f32 %v390_v11 }
 0x324   : > { %v259_v14 = vpack.c.bf16 %v258_v12, %v258_v12 }
 0x326   : > { %494 = vmatmul.msk.bf16.vlgmr.msra.gmra.mxu3 %vm164_vm0, %v259_v14 }
 0x329   : > { %v537_v15 = vpop.eup %536 }
 0x32a   : > { %v392_v16 = vmul.f32 %v537_v15, %v531_v62 }
 0x32c   : > { %v393_v17 = vpack.c.bf16 %v392_v16, %v392_v16 }
 0x32e   : > { %498 = vmatmul.msk.bf16.vlgmr.msrb.gmra.mxu2 %vm164_vm0, %v393_v17 }
 0x333   : > { %327 = vrot.lane.b32.xlu0 %v604_v13, %s558_s5 }
 0x392   : > { %v323_v18 = vpop.xlane.xlu0 %322 }
 0x393   : > { %538 = vrcp.f32 %v323_v18 }
 0x399   : > { %v539_v19 = vpop.eup %538 }
 0x39a   : > { %v325_v20 = vmul.f32 %v539_v19, %v533_v8 }
 0x39c   : > { %v326_v23 = vpack.c.bf16 %v325_v20, %v325_v20 }
 0x3a5   : > { %v328_v21 = vpop.permute.xlu0 %327 }
 0x3a6   : > { %v333_v22 = vsel %vm201_vm1, %v328_v21, 0 }
 0x3a7   : > { %342 = vmatpush.bf16.msrb.mxu3 %v333_v22 }
 0x3a9   : > { %v277_v24 = vpop.f32.mrf.mxu3 }
 0x3aa   : > { %v281_v25 = vpack.c.bf16 %v277_v24, %v277_v24  ;;  %496 = vmatmul.msk.bf16.vlgmr.msrb.gmra.mxu3 %vm164_vm0, %v326_v23 }
 0x3ac   : > { %283 = vrot.lane.b32.xlu2 %v281_v25, %s559_s6 }
 0x3b1   : > { %v279_v26 = vpop.f32.mrf.mxu3  ;;  %v411_v27 = vpop.f32.mrf.mxu2 }
 0x3b2   : > { %v415_v32 = vpack.c.bf16 %v411_v27, %v411_v27 }
 0x3b9   : > { %v413_v13 = vpop.f32.mrf.mxu2 }
 0x406   : > { %v284_v28 = vpop.permute.xlu2 %283 }
 0x407   : > { %287 = vst.msk [vmem:[%s630_s4] sm:$0xf] %vm286_vm3, %v284_v28 }
 0x42d   : > { %v344_v29 = vpop.f32.mrf.mxu3 }
 0x42e   : > { %v348_v30 = vpack.c.bf16 %v344_v29, %v344_v29 }
 0x430   : > { %350 = vrot.lane.b32.xlu1 %v348_v30, %s560_s7 }
 0x435   : > { %v346_v31 = vpop.f32.mrf.mxu3 }
 0x438   : > { %417 = vrot.lane.b32.xlu1 %v415_v32, %s561_s8 }
 0x4a2   : > { %v351_v33 = vpop.permute.xlu1 %350 }
 0x4a3   : > { %354 = vst.msk [vmem:[%s630_s4] sm:$0xf] %vm353_vm4, %v351_v33 }
 0x4aa   : > { %v418_v34 = vpop.permute.xlu1 %417 }
 0x4ab   : > { %421 = vst.msk [vmem:[%s630_s4] sm:$0xf] %vm420_vm5, %v418_v34 }
 0x4ac PF: > { %s12_s9 = sadd.s32 1, %s546_s9  }
 0x4ad   : > { %p9_p4 = scmp.ge.s32.totalorder %s12_s9, 4  }
 0x4af   :  { %11 = sbr.rel (!%p9_p4) target bundleno = 1 (0x1), region = 61 }

// kernel: squeeze.1
= control target key start
LH: loop header
LB: loop body
LE: loop exit
PB: predicated region body
PF: predicated region fallthrough
CT: control target
= control target key end

     0   :  { %s80_s0 = inlined_call_operand.vmem [shape: f32[16], index: 0, kind: input, shape index: {}]   ;;  %s81_s1 = inlined_call_operand.hbm [shape: f32[2,8], index: 1, kind: output, shape index: {}]  }
   0x1   :  { %v5_v0 = vld [vmem:[%s80_s0] sm:$0x1] }
   0x2   :  { %2 = vsyncpa [#allocation1], 0  ;;  %6 = vst [vmem:[#allocation3] sm:$0x1] %v5_v0  ;;  %vm8_vm0 = vcmask 64512   ;;  %s62_s0 = smov 120  }
   0x3   :  { %s63_s8 = smov [#allocation0]   ;;  %s27_s1 = sshll.u32 %s81_s1, 4  ;;  %s28_s1 = int_to_ptr.hbm [resolvable:$true] %s27_s1 }
   0x4   :  { %s25_s9 = sshll.u32 %s63_s8, 4  ;;  %s26_s9 = int_to_ptr.vmem [resolvable:$true] %s25_s9 }
   0x9   :  { %v10_v1 = vld [vmem:[#allocation3] sm:$0x1]  }
   0xa   :  { %v7_v2 = vld [vmem:[#allocation3] sm:$0x1]   ;;  %11 = vrot.lane.b32.xlu0 %v10_v1, %s62_s0 }
   0xb   :  { %9 = vst.msk [vmem:[#allocation2] sm:$0x1] %vm8_vm0, %v7_v2  }
  0x7c   :  { %v12_v3 = vpop.permute.xlu0 %11  }
  0x7d   :  { %15 = vst.msk [vmem:[#allocation2 + $0x1] sm:$0x1] %vm8_vm0, %v12_v3  }
  0x84   :  { %v18_v4 = vld [vmem:[#allocation2] sm:$0x3] }
  0x85   :  { %21 = vst [vmem:[#allocation0] sm:$0x3] %v18_v4 }
  0x86   :  { %30 = dma.vmem_to_hbm [thread:$0]  %s26_s9, 32, %s28_s1, [#allocation1]  }
  0x87   :  { %60 = dma.done.wait [#allocation1], 32  }
  0x88   :  { %61 = vsyncadd [#allocation1], 4294967264 }
  0x89   :  { %33 = vsyncpa [#allocation1], 1 }

// kernel: custom_bert_forward.21
= control target key start
LH: loop header
LB: loop body
LE: loop exit
PB: predicated region body
PF: predicated region fallthrough
CT: control target
= control target key end

     0   :  { %vm119_vm0 = vcmask 261120   ;;  %v251_v21 = vmov 32.0   ;;  %vm185_vm6 = vcmask 257024   ;;  %s336_s1 = inlined_call_operand.vmem [shape: bf16[128,32], index: 1, kind: input, shape index: {}]   ;;  %s337_s2 = inlined_call_operand.vmem [shape: f32[1,32], index: 2, kind: input, shape index: {}]   ;;  %s338_s0 = inlined_call_operand.vmem [shape: bf16[16,128], index: 0, kind: input, shape index: {}]   ;;  %s339_s3 = inlined_call_operand.vmem [shape: bf16[16,32], index: 3, kind: input, shape index: {}]   ;;  %s340_s4 = inlined_call_operand.vmem [shape: f32[1,32], index: 4, kind: input, shape index: {}]   ;;  %s341_s5 = inlined_call_operand.vmem [shape: f32[1,32], index: 5, kind: input, shape index: {}]   ;;  %s342_s6 = inlined_call_operand.vmem [shape: bf16[16,32], index: 6, kind: output, shape index: {}]  }
   0x1   :  { %v236_v0 = vld [vmem:[%s336_s1 + $0x38] sm:$0xff]  ;;  %v235_v1 = vld [vmem:[%s336_s1 + $0x30] sm:$0xff]  ;;  %v234_v2 = vld [vmem:[%s336_s1 + $0x28] sm:$0xff]  ;;  %245 = vrcp.f32 %v251_v21 }
   0x2   :  { %99 = vmatpush.bf16.msra.mxu0 %v236_v0  ;;  %v233_v3 = vld [vmem:[%s336_s1 + $0x20] sm:$0xff]  ;;  %v232_v4 = vld [vmem:[%s336_s1 + $0x18] sm:$0xff]  ;;  %v231_v5 = vld [vmem:[%s336_s1 + $0x10] sm:$0xff] }
   0x3   :  { %v230_v6 = vld [vmem:[%s336_s1 + $0x8] sm:$0xff]  ;;  %v229_v7 = vld [vmem:[%s336_s1] sm:$0xff] }
   0x4   :  { %v228_v8 = vld [vmem:[%s338_s0] sm:$0xff] }
   0x5   :  { %v238_v9 = vld [vmem:[%s339_s3] sm:$0xff]  }
   0x6   :  { %100 = vmatpush.bf16.msra.mxu0 %v235_v1  ;;  %v242_v10 = vld [vmem:[%s337_s2] ss:$0 sm:$0xff]  ;;  %v239_v11 = vunpack.c.l.bf16 %v238_v9  ;;  %v240_v16 = vunpack.c.h.bf16 %v238_v9 }
   0x7   :  { %v246_v22 = vpop.eup %245  ;;  %v243_v52 = vld [vmem:[%s340_s4] ss:$0 sm:$0xff] }
   0x8   :  { %v127_v23 = vmul.f32 32.0, %v246_v22  ;;  %vm131_vm1 = vweird.f32 %v246_v22  ;;  %v244_v55 = vld [vmem:[%s341_s5] ss:$0 sm:$0xff] }
   0xa   :  { %101 = vmatpush.bf16.msra.mxu0 %v234_v2  ;;  %v128_v24 = vsub.f32 1.0, %v127_v23 }
   0xc   :  { %v129_v25 = vmul.f32 %v246_v22, %v128_v24 }
   0xe   :  { %102 = vmatpush.bf16.msra.mxu0 %v233_v3  ;;  %v130_v26 = vadd.f32 %v246_v22, %v129_v25 }
  0x10   :  { %v132_v27 = vsel %vm131_vm1, %v246_v22, %v130_v26 }
  0x12   :  { %103 = vmatpush.bf16.msra.mxu0 %v232_v4 }
  0x16   :  { %104 = vmatpush.bf16.msra.mxu0 %v231_v5 }
  0x1a   :  { %105 = vmatpush.bf16.msra.mxu0 %v230_v6 }
  0x1e   :  { %106 = vmatpush.bf16.msra.mxu0 %v229_v7 }
  0x21   :  { %107 = vmatmul.bf16.vlgmr.msra.gmra.mxu0 %v228_v8 }
  0x9e   :  { %v108_v12 = vpop.f32.mrf.mxu0 }
  0x9f   :  { %v109_v13 = vadd.f32 %v242_v10, %v108_v12 }
  0xa1   :  { %v117_v14 = vadd.f32 %v239_v11, %v109_v13 }
  0xa3   :  { %v120_v15 = vsel %vm119_vm0, %v117_v14, 0.0 }
  0xa4   :  { %121 = vadd.xlane.f32.xlu0 %v120_v15 }
  0xa6   :  { %v110_v17 = vpop.f32.mrf.mxu0 }
  0xa7   :  { %v111_v18 = vadd.f32 %v242_v10, %v110_v17 }
  0xa9   :  { %v118_v19 = vadd.f32 %v240_v16, %v111_v18 }
  0xab   :  { %v123_v20 = vsel %vm119_vm0, %v118_v19, 0.0 }
  0xac   :  { %124 = vadd.xlane.f32.xlu0 %v123_v20 }
 0x117   :  { %v122_v28 = vpop.xlane.xlu0 %121 }
 0x118   :  { %v133_v29 = vmul.f32 %v132_v27, %v122_v28 }
 0x11a   :  { %v135_v30 = vsub.f32 %v117_v14, %v133_v29 }
 0x11c   :  { %v137_v31 = vmul.f32 %v135_v30, %v135_v30 }
 0x11e   :  { %v139_v32 = vsel %vm119_vm0, %v137_v31, 0.0 }
 0x11f   :  { %140 = vadd.xlane.f32.xlu1 %v139_v32  ;;  %v125_v33 = vpop.xlane.xlu0 %124 }
 0x120   :  { %v134_v34 = vmul.f32 %v132_v27, %v125_v33 }
 0x122   :  { %v136_v35 = vsub.f32 %v118_v19, %v134_v34 }
 0x124   :  { %v138_v36 = vmul.f32 %v136_v35, %v136_v35 }
 0x126   :  { %v142_v37 = vsel %vm119_vm0, %v138_v36, 0.0 }
 0x127   :  { %143 = vadd.xlane.f32.xlu1 %v142_v37 }
 0x192   :  { %v141_v38 = vpop.xlane.xlu1 %140 }
 0x193   :  { %v145_v39 = vmul.f32 %v141_v38, %v132_v27 }
 0x195   :  { %v147_v40 = vadd.f32 1e-12, %v145_v39 }
 0x197   :  { %247 = vrsqrt.f32 %v147_v40  ;;  %vm155_vm3 = vweird.f32 %v147_v40 }
 0x19a   :  { %v144_v41 = vpop.xlane.xlu1 %143 }
 0x19b   :  { %v146_v42 = vmul.f32 %v144_v41, %v132_v27 }
 0x19d   :  { %v248_v43 = vpop.eup %247  ;;  %v148_v44 = vadd.f32 1e-12, %v146_v42 }
 0x19e   :  { %v150_v45 = vmul.f32 %v248_v43, %v147_v40  ;;  %vm156_vm2 = vweird.f32 %v248_v43 }
 0x19f   :  { %249 = vrsqrt.f32 %v148_v44  ;;  %vm157_vm4 = vmor %vm155_vm3, %vm156_vm2  ;;  %vm165_vm7 = vweird.f32 %v148_v44 }
 0x1a0   :  { %v151_v46 = vmul.f32 %v248_v43, %v150_v45 }
 0x1a2   :  { %v152_v47 = vmul.f32 0.5, %v151_v46 }
 0x1a4   :  { %v153_v48 = vsub.f32 1.5, %v152_v47 }
 0x1a5   :  { %v250_v49 = vpop.eup %249 }
 0x1a6   :  { %v154_v50 = vmul.f32 %v248_v43, %v153_v48  ;;  %v160_v51 = vmul.f32 %v250_v49, %v148_v44  ;;  %vm166_vm5 = vweird.f32 %v250_v49 }
 0x1a7   :  { %vm167_vm8 = vmor %vm165_vm7, %vm166_vm5 }
 0x1a8   :  { %v158_v53 = vsel %vm157_vm4, %v248_v43, %v154_v50  ;;  %v161_v54 = vmul.f32 %v250_v49, %v160_v51 }
 0x1a9   :  { %v169_v56 = vmul.f32 %v158_v53, %v135_v30 }
 0x1aa   :  { %v162_v57 = vmul.f32 0.5, %v161_v54 }
 0x1ab   :  { %v175_v58 = vmul.f32 %v243_v52, %v169_v56 }
 0x1ac   :  { %v163_v59 = vsub.f32 1.5, %v162_v57 }
 0x1ad   :  { %v181_v60 = vadd.f32 %v244_v55, %v175_v58 }
 0x1ae   :  { %v164_v61 = vmul.f32 %v250_v49, %v163_v59 }
 0x1af   :  { %v183_v62 = vpack.c.bf16 %v181_v60, %v181_v60 }
 0x1b0   :  { %v168_v63 = vsel %vm167_vm8, %v250_v49, %v164_v61 }
 0x1b1   :  { %186 = vst.msk [vmem:[%s342_s6] sm:$0xf] %vm185_vm6, %v183_v62  ;;  %v170_v0 = vmul.f32 %v168_v63, %v136_v35 }
 0x1b3   :  { %v176_v1 = vmul.f32 %v243_v52, %v170_v0 }
 0x1b5   :  { %v182_v2 = vadd.f32 %v244_v55, %v176_v1 }
 0x1b7   :  { %v184_v3 = vpack.c.bf16 %v182_v2, %v182_v2 }
 0x1b9   :  { %187 = vst.msk [vmem:[%s342_s6 + $0x4] sm:$0xf] %vm185_vm6, %v184_v3 }

// kernel: custom_bert_forward.27
= control target key start
LH: loop header
LB: loop body
LE: loop exit
PB: predicated region body
PF: predicated region fallthrough
CT: control target
= control target key end

     0   :  { %vm42_vm0 = vcmask 261120   ;;  %s167_s1 = inlined_call_operand.vmem [shape: bf16[32,128], index: 1, kind: input, shape index: {}]   ;;  %s168_s2 = inlined_call_operand.vmem [shape: f32[1,128], index: 2, kind: input, shape index: {}]   ;;  %s169_s0 = inlined_call_operand.vmem [shape: bf16[16,32], index: 0, kind: input, shape index: {}]   ;;  %s170_s3 = inlined_call_operand.vmem [shape: f32[16,128], index: 3, kind: output, shape index: {}]  }
   0x1   :  { %v119_v0 = vld [vmem:[%s167_s1 + $0x8] sm:$0xff]  ;;  %v118_v1 = vld [vmem:[%s167_s1] sm:$0xff] }
   0x2   :  { %52 = vmatpush.bf16.msra.mxu0 %v119_v0  ;;  %v117_v2 = vld [vmem:[%s169_s0] sm:$0xff] }
   0x3   :  { %v120_v3 = vld [vmem:[%s168_s2] ss:$0 sm:$0xff] }
   0x6   :  { %53 = vmatpush.bf16.msra.mxu0 %v118_v1 }
   0x9   :  { %116 = vmatmul.msk.bf16.vlgmr.msra.gmra.mxu0 %vm42_vm0, %v117_v2 }
  0x86   :  { %v55_v4 = vpop.f32.mrf.mxu0 }
  0x87   :  { %v56_v5 = vadd.f32 %v120_v3, %v55_v4 }
  0x89   :  { %v60_v6 = vsub.f32 0.0, %v56_v5 }
  0x8b   :  { %v62_v7 = vmul.f32 1.442695, %v60_v6 }
  0x8d   :  { %121 = vpow2.f32 %v62_v7 }
  0x8e   :  { %v57_v8 = vpop.f32.mrf.mxu0 }
  0x8f   :  { %v58_v9 = vadd.f32 %v120_v3, %v57_v8 }
  0x91   :  { %v61_v10 = vsub.f32 0.0, %v58_v9 }
  0x93   :  { %v122_v11 = vpop.eup %121  ;;  %v64_v12 = vmul.f32 1.442695, %v61_v10 }
  0x94   :  { %v66_v13 = vadd.f32 1.0, %v122_v11 }
  0x95   :  { %123 = vpow2.f32 %v64_v12 }
  0x96   :  { %125 = vrcp.f32 %v66_v13  ;;  %v79_v19 = vand.u32 2147483648, %v66_v13  ;;  %v77_v21 = vand.u32 2147483647, %v66_v13  ;;  %vm73_vm2 = vweird.f32 %v66_v13 }
  0x98   :  { %v80_v24 = vor.u32 1.1754944e-38, %v79_v19  ;;  %vm78_vm4 = vcmp.eq.f32.partialorder %v77_v21, 8.507059e+37 }
  0x9b   :  { %v124_v14 = vpop.eup %123 }
  0x9c   :  { %v126_v15 = vpop.eup %125  ;;  %v67_v16 = vadd.f32 1.0, %v124_v14 }
  0x9d   :  { %v69_v17 = vmul.f32 %v126_v15, %v66_v13  ;;  %vm74_vm1 = vweird.f32 %v126_v15 }
  0x9e   :  { %127 = vrcp.f32 %v67_v16  ;;  %vm75_vm3 = vmor %vm73_vm2, %vm74_vm1  ;;  %v94_v29 = vand.u32 2147483648, %v67_v16  ;;  %v92_v31 = vand.u32 2147483647, %v67_v16  ;;  %vm88_vm6 = vweird.f32 %v67_v16 }
  0x9f   :  { %v70_v18 = vsub.f32 1.0, %v69_v17 }
  0xa0   :  { %v95_v33 = vor.u32 1.1754944e-38, %v94_v29  ;;  %vm93_vm8 = vcmp.eq.f32.partialorder %v92_v31, 8.507059e+37 }
  0xa1   :  { %v71_v20 = vmul.f32 %v126_v15, %v70_v18 }
  0xa3   :  { %v72_v22 = vadd.f32 %v126_v15, %v71_v20 }
  0xa4   :  { %v128_v23 = vpop.eup %127 }
  0xa5   :  { %v76_v25 = vsel %vm75_vm3, %v126_v15, %v72_v22  ;;  %v84_v26 = vmul.f32 %v128_v23, %v67_v16  ;;  %vm89_vm5 = vweird.f32 %v128_v23 }
  0xa6   :  { %v81_v27 = vsel %vm78_vm4, %v80_v24, %v76_v25  ;;  %vm90_vm7 = vmor %vm88_vm6, %vm89_vm5 }
  0xa7   :  { %98 = vst [vmem:[%s170_s3] sm:$0xff] %v81_v27  ;;  %v85_v28 = vsub.f32 1.0, %v84_v26 }
  0xa9   :  { %v86_v30 = vmul.f32 %v128_v23, %v85_v28 }
  0xab   :  { %v87_v32 = vadd.f32 %v128_v23, %v86_v30 }
  0xad   :  { %v91_v34 = vsel %vm90_vm7, %v128_v23, %v87_v32 }
  0xae   :  { %v96_v35 = vsel %vm93_vm8, %v95_v33, %v91_v34 }
  0xaf   :  { %99 = vst [vmem:[%s170_s3 + $0x8] sm:$0xff] %v96_v35 }

</bundles_post_ra>
